<compile_context>
chip_gen: v6e
topology: v6e:2x2x1
jax: 0.10.0
libtpu: 0.0.40
codegen_flags: <defaults>
</compile_context>

<pallas_src>
import functools

import jax
import jax.numpy as jnp
from jax.experimental import pallas as pl
from jax.experimental.pallas import tpu as pltpu

INPUT_DIM = 8
HIDDEN_DIM = 64
OUTPUT_DIM = 1
NUM_LAYERS = 2          # hard-wired as two explicit cells in the kernel

LANE = 128              # vreg lane width
SUBLANE = 8             # f32 sublane count
DP = LANE               # padded input-feature dim (8 -> 128)
OP = LANE               # lane-dense padded output dim (1 -> 128)


def _gates_to_hc(gates, c):
    """PyTorch gate order (i, f, g, o), contiguous 64-lane slices."""
    H = HIDDEN_DIM
    i = jax.nn.sigmoid(gates[:, 0 * H:1 * H])
    f = jax.nn.sigmoid(gates[:, 1 * H:2 * H])
    g = jnp.tanh(gates[:, 2 * H:3 * H])
    o = jax.nn.sigmoid(gates[:, 3 * H:4 * H])
    c_new = f * c + i * g
    h_new = o * jnp.tanh(c_new)
    return h_new, c_new


def stock_lstm_kernel(
    x_ref,      # (T*B, DP)  bf16, time-major rows (t*B + b), feature-padded
    wih0_ref,   # (DP, 4H)   bf16, layer-0 input weights (rows >= INPUT_DIM zero)
    whh0_ref,   # (H, 4H)    bf16, layer-0 recurrent weights
    w1_ref,     # (2H, 4H)   bf16, layer-1 fused [W_ih1^T ; W_hh1^T]
    b_ref,      # (2, 4H)    f32, row0 = bih0 + bhh0, row1 = bih1 + bhh1
    fcw_ref,    # (1, H)     f32
    fcb_ref,    # (1, 1)     f32
    out_ref,    # (B, OP)    f32, lane-dense
    *,
    seq_len,
    batch,
):
    T, B, H = seq_len, batch, HIDDEN_DIM

    # Layer-0 input projection for ALL timesteps as one batched MXU matmul,
    # with b0 folded in (single broadcast, off the serial chain).
    gx = (
        jnp.dot(x_ref[...], wih0_ref[...], preferred_element_type=jnp.float32)
        + b_ref[0:1, :]
    )                                                           # (T*B, 4H) f32

    # Hoist layer-1 bias broadcast out of the statically unrolled loop
    # (JAX does not CSE broadcast_in_dim).
    b1 = jnp.broadcast_to(b_ref[1:2, :], (B, 4 * H))            # (B, 4H) f32

    h0 = jnp.zeros((B, H), jnp.float32)
    c0 = jnp.zeros((B, H), jnp.float32)
    h1 = jnp.zeros((B, H), jnp.float32)
    c1 = jnp.zeros((B, H), jnp.float32)

    # Static unroll over the short sequence; T is a trace-time constant.
    for t in range(T):
        # Layer 0: only the recurrent matmul (K = 64) sits on the serial chain.
        g0 = gx[t * B:(t + 1) * B, :] + jnp.dot(
            h0.astype(jnp.bfloat16), whh0_ref[...],
            preferred_element_type=jnp.float32)
        h0, c0 = _gates_to_hc(g0, c0)

        # Layer 1: pack [h0 | h1] into 128 real K lanes.
        xh1 = jnp.concatenate([h0, h1], axis=1).astype(jnp.bfloat16)  # (B, 2H)
        g1 = b1 + jnp.dot(xh1, w1_ref[...],
                          preferred_element_type=jnp.float32)
        h1, c1 = _gates_to_hc(g1, c1)

    # fc head: VPU multiply + lane reduction (no MXU pass); lane-dense store.
    y = jnp.sum(h1 * fcw_ref[...], axis=-1, keepdims=True) + fcb_ref[...]  # (B,1)
    out_ref[...] = jnp.broadcast_to(y, out_ref.shape)


def pack_params(params):
    """One-time packing/padding/bf16 casting of the PyTorch-layout params."""
    H, D = HIDDEN_DIM, INPUT_DIM
    wih0 = jnp.zeros((DP, 4 * H), jnp.float32).at[:D, :].set(params["wih0"].T)
    return {
        "wih0": wih0.astype(jnp.bfloat16),                               # (DP, 4H)
        "whh0": params["whh0"].T.astype(jnp.bfloat16),                   # (H, 4H)
        "w1": jnp.concatenate([params["wih1"].T, params["whh1"].T],
                              axis=0).astype(jnp.bfloat16),              # (2H, 4H)
        "b": jnp.stack([params["bih0"] + params["bhh0"],
                        params["bih1"] + params["bhh1"]], axis=0)
                .astype(jnp.float32),                                    # (2, 4H)
        "fcw": params["fcw"].reshape(1, H).astype(jnp.float32),          # (1, H)
        "fcb": params["fcb"].reshape(1, 1).astype(jnp.float32),          # (1, 1)
    }


@jax.jit
def stock_lstm_forward(x, packed):
    """x: (B, T, D) float32, packed = pack_params(params). Returns (B, 1)."""
    B, T, D = x.shape
    H = HIDDEN_DIM
    B_PAD = ((B + SUBLANE - 1) // SUBLANE) * SUBLANE

    # Pad batch to 8 sublanes, features to 128 lanes, time-major, flatten rows.
    x_p = jnp.pad(x, ((0, B_PAD - B), (0, 0), (0, DP - D)))
    x_tm = jnp.transpose(x_p, (1, 0, 2)).reshape(T * B_PAD, DP)
    x_tm = x_tm.astype(jnp.bfloat16)

    kernel = functools.partial(stock_lstm_kernel, seq_len=T, batch=B_PAD)

    out_pad = pl.pallas_call(
        kernel,
        out_shape=jax.ShapeDtypeStruct((B_PAD, OP), jnp.float32),
        grid=(1,),
        in_specs=[
            pl.BlockSpec((T * B_PAD, DP), lambda i: (0, 0)),
            pl.BlockSpec((DP, 4 * H), lambda i: (0, 0)),
            pl.BlockSpec((H, 4 * H), lambda i: (0, 0)),
            pl.BlockSpec((2 * H, 4 * H), lambda i: (0, 0)),
            pl.BlockSpec((2, 4 * H), lambda i: (0, 0)),
            pl.BlockSpec((1, H), lambda i: (0, 0)),
            pl.BlockSpec((1, 1), lambda i: (0, 0)),
        ],
        out_specs=pl.BlockSpec((B_PAD, OP), lambda i: (0, 0)),
        compiler_params=pltpu.CompilerParams(
            dimension_semantics=("arbitrary",)),
    )(x_tm, packed["wih0"], packed["whh0"], packed["w1"],
      packed["b"], packed["fcw"], packed["fcb"])

    return out_pad[:B, :OUTPUT_DIM]


def stock_lstm_ref(x, params):
    """Pure-JAX f32 reference matching PyTorch nn.LSTM + Linear (eval mode)."""
    B, T, D = x.shape
    H = HIDDEN_DIM

    def cell(x_t, h, c, wih, whh, bih, bhh):
        gates = x_t @ wih.T + h @ whh.T + bih + bhh
        i = jax.nn.sigmoid(gates[:, 0 * H:1 * H])
        f = jax.nn.sigmoid(gates[:, 1 * H:2 * H])
        g = jnp.tanh(gates[:, 2 * H:3 * H])
        o = jax.nn.sigmoid(gates[:, 3 * H:4 * H])
        c_new = f * c + i * g
        h_new = o * jnp.tanh(c_new)
        return h_new, c_new

    h0 = jnp.zeros((B, H), jnp.float32)
    c0 = jnp.zeros((B, H), jnp.float32)
    h1 = jnp.zeros((B, H), jnp.float32)
    c1 = jnp.zeros((B, H), jnp.float32)
    for t in range(T):
        h0, c0 = cell(x[:, t, :], h0, c0,
                      params["wih0"], params["whh0"],
                      params["bih0"], params["bhh0"])
        h1, c1 = cell(h0, h1, c1,
                      params["wih1"], params["whh1"],
                      params["bih1"], params["bhh1"])
    return h1 @ params["fcw"].T + params["fcb"]


def init_params(key):
    """Deterministic init mirroring PyTorch shapes: U(-1/sqrt(H), 1/sqrt(H))."""
    H, D, O = HIDDEN_DIM, INPUT_DIM, OUTPUT_DIM
    bound = 1.0 / jnp.sqrt(jnp.float32(H))
    shapes = {
        "wih0": (4 * H, D), "whh0": (4 * H, H), "bih0": (4 * H,), "bhh0": (4 * H,),
        "wih1": (4 * H, H), "whh1": (4 * H, H), "bih1": (4 * H,), "bhh1": (4 * H,),
        "fcw": (O, H), "fcb": (O,),
    }
    params = {}
    keys = jax.random.split(key, len(shapes))
    for k, (name, shp) in zip(keys, sorted(shapes.items())):
        params[name] = jax.random.uniform(
            k, shp, jnp.float32, minval=-bound, maxval=bound)
    return params


if __name__ == "__main__":
    key = jax.random.PRNGKey(0)
    pkey, xkey = jax.random.split(key)
    params = init_params(pkey)
    packed = pack_params(params)          # one-time weight packing

    B, T = 2, 8  # batch=2, seq=8, features=input_dim=8
    x = jax.random.normal(xkey, (B, T, INPUT_DIM), jnp.float32)

    out = stock_lstm_forward(x, packed)
    out = jax.block_until_ready(out)

    ref = stock_lstm_ref(x, params)
    assert out.shape == (B, OUTPUT_DIM)
    # bf16 MXU operands over an 8-step recurrence -> loosened tolerance.
    assert jnp.allclose(out, ref, atol=2e-2, rtol=2e-2), (out, ref)

    print("KERNEL_OK")
</pallas_src>

<mosaic_0001>
module attributes {stable_mosaic.version = 11 : i64} {
  func.func @stock_lstm_kernel(%arg0: i32, %arg1: memref<64x128xbf16, #tpu.memory_space<vmem>>, %arg2: memref<128x256xbf16, #tpu.memory_space<vmem>>, %arg3: memref<64x256xbf16, #tpu.memory_space<vmem>>, %arg4: memref<128x256xbf16, #tpu.memory_space<vmem>>, %arg5: memref<2x256xf32, #tpu.memory_space<vmem>>, %arg6: memref<1x64xf32, #tpu.memory_space<vmem>>, %arg7: memref<1x1xf32, #tpu.memory_space<vmem>>, %arg8: memref<8x128xf32, #tpu.memory_space<vmem>>) attributes {dimension_semantics = [#tpu.dimension_semantics<arbitrary>], iteration_bounds = array<i64: 1>, scalar_prefetch = 0 : i64, scratch_operands = 0 : i64, tpu.core_type = #tpu.core_type<tc>, window_params = [{pipeline_mode = #tpu.pipeline_mode<synchronous>, transform_indices = @transform_0, window_bounds = array<i64: 64, 128>}, {pipeline_mode = #tpu.pipeline_mode<synchronous>, transform_indices = @transform_1, window_bounds = array<i64: 128, 256>}, {pipeline_mode = #tpu.pipeline_mode<synchronous>, transform_indices = @transform_2, window_bounds = array<i64: 64, 256>}, {pipeline_mode = #tpu.pipeline_mode<synchronous>, transform_indices = @transform_3, window_bounds = array<i64: 128, 256>}, {pipeline_mode = #tpu.pipeline_mode<synchronous>, transform_indices = @transform_4, window_bounds = array<i64: 2, 256>}, {pipeline_mode = #tpu.pipeline_mode<synchronous>, transform_indices = @transform_5, window_bounds = array<i64: 1, 64>}, {pipeline_mode = #tpu.pipeline_mode<synchronous>, transform_indices = @transform_6, window_bounds = array<i64: 1, 1>}, {pipeline_mode = #tpu.pipeline_mode<synchronous>, transform_indices = @transform_7, window_bounds = array<i64: 8, 128>}]} {
    %c0 = arith.constant 0 : index
    %c0_0 = arith.constant 0 : index
    %0 = vector.load %arg1[%c0, %c0_0] : memref<64x128xbf16, #tpu.memory_space<vmem>>, vector<64x128xbf16>
    %c0_1 = arith.constant 0 : index
    %c0_2 = arith.constant 0 : index
    %1 = vector.load %arg2[%c0_1, %c0_2] : memref<128x256xbf16, #tpu.memory_space<vmem>>, vector<128x256xbf16>
    %cst = arith.constant dense<0.000000e+00> : vector<64x256xf32>
    %2 = tpu.matmul %0, %1, %cst {dimension_numbers = #tpu.dot_dimension_numbers<[1], [0], [0], [1], [0, 0, 1, 1], [], []>} : vector<64x128xbf16>, vector<128x256xbf16>, vector<64x256xf32> -> vector<64x256xf32>
    %c0_3 = arith.constant 0 : index
    %c0_4 = arith.constant 0 : index
    %3 = vector.load %arg5[%c0_3, %c0_4] : memref<2x256xf32, #tpu.memory_space<vmem>>, vector<1x256xf32>
    %4 = vector.broadcast %3 : vector<1x256xf32> to vector<64x256xf32>
    %5 = arith.addf %2, %4 : vector<64x256xf32>
    %c1 = arith.constant 1 : index
    %c0_5 = arith.constant 0 : index
    %6 = vector.load %arg5[%c1, %c0_5] : memref<2x256xf32, #tpu.memory_space<vmem>>, vector<1x256xf32>
    %7 = vector.shape_cast %6 : vector<1x256xf32> to vector<1x256xf32>
    %8 = vector.broadcast %7 : vector<1x256xf32> to vector<8x256xf32>
    %cst_6 = arith.constant 0.000000e+00 : f32
    %9 = vector.broadcast %cst_6 : f32 to vector<8x64xf32>
    %cst_7 = arith.constant 0.000000e+00 : f32
    %10 = vector.broadcast %cst_7 : f32 to vector<8x64xf32>
    %cst_8 = arith.constant 0.000000e+00 : f32
    %11 = vector.broadcast %cst_8 : f32 to vector<8x64xf32>
    %cst_9 = arith.constant 0.000000e+00 : f32
    %12 = vector.broadcast %cst_9 : f32 to vector<8x64xf32>
    %13 = vector.extract_strided_slice %5 {offsets = [0, 0], sizes = [8, 256], strides = [1, 1]} : vector<64x256xf32> to vector<8x256xf32>
    %14 = arith.truncf %9 : vector<8x64xf32> to vector<8x64xbf16>
    %c0_10 = arith.constant 0 : index
    %c0_11 = arith.constant 0 : index
    %15 = vector.load %arg3[%c0_10, %c0_11] : memref<64x256xbf16, #tpu.memory_space<vmem>>, vector<64x256xbf16>
    %cst_12 = arith.constant dense<0.000000e+00> : vector<8x256xf32>
    %16 = tpu.matmul %14, %15, %cst_12 {dimension_numbers = #tpu.dot_dimension_numbers<[1], [0], [0], [1], [0, 0, 1, 1], [], []>} : vector<8x64xbf16>, vector<64x256xbf16>, vector<8x256xf32> -> vector<8x256xf32>
    %17 = arith.addf %13, %16 : vector<8x256xf32>
    %18 = vector.extract_strided_slice %17 {offsets = [0, 0], sizes = [8, 64], strides = [1, 1]} : vector<8x256xf32> to vector<8x64xf32>
    %19 = arith.negf %18 : vector<8x64xf32>
    %20 = math.exp %19 : vector<8x64xf32>
    %cst_13 = arith.constant 1.000000e+00 : f32
    %21 = vector.broadcast %cst_13 : f32 to vector<8x64xf32>
    %22 = arith.addf %21, %20 : vector<8x64xf32>
    %23 = arith.divf %21, %22 : vector<8x64xf32>
    %24 = vector.extract_strided_slice %17 {offsets = [0, 64], sizes = [8, 64], strides = [1, 1]} : vector<8x256xf32> to vector<8x64xf32>
    %25 = arith.negf %24 : vector<8x64xf32>
    %26 = math.exp %25 : vector<8x64xf32>
    %cst_14 = arith.constant 1.000000e+00 : f32
    %27 = vector.broadcast %cst_14 : f32 to vector<8x64xf32>
    %28 = arith.addf %27, %26 : vector<8x64xf32>
    %29 = arith.divf %27, %28 : vector<8x64xf32>
    %30 = vector.extract_strided_slice %17 {offsets = [0, 128], sizes = [8, 64], strides = [1, 1]} : vector<8x256xf32> to vector<8x64xf32>
    %31 = math.tanh %30 : vector<8x64xf32>
    %32 = vector.extract_strided_slice %17 {offsets = [0, 192], sizes = [8, 64], strides = [1, 1]} : vector<8x256xf32> to vector<8x64xf32>
    %33 = arith.negf %32 : vector<8x64xf32>
    %34 = math.exp %33 : vector<8x64xf32>
    %cst_15 = arith.constant 1.000000e+00 : f32
    %35 = vector.broadcast %cst_15 : f32 to vector<8x64xf32>
    %36 = arith.addf %35, %34 : vector<8x64xf32>
    %37 = arith.divf %35, %36 : vector<8x64xf32>
    %38 = arith.mulf %29, %10 : vector<8x64xf32>
    %39 = arith.mulf %23, %31 : vector<8x64xf32>
    %40 = arith.addf %38, %39 : vector<8x64xf32>
    %41 = math.tanh %40 : vector<8x64xf32>
    %42 = arith.mulf %37, %41 : vector<8x64xf32>
    %43 = tpu.concatenate %42, %11 in 1 : vector<8x64xf32>, vector<8x64xf32> -> vector<8x128xf32>
    %44 = arith.truncf %43 : vector<8x128xf32> to vector<8x128xbf16>
    %c0_16 = arith.constant 0 : index
    %c0_17 = arith.constant 0 : index
    %45 = vector.load %arg4[%c0_16, %c0_17] : memref<128x256xbf16, #tpu.memory_space<vmem>>, vector<128x256xbf16>
    %cst_18 = arith.constant dense<0.000000e+00> : vector<8x256xf32>
    %46 = tpu.matmul %44, %45, %cst_18 {dimension_numbers = #tpu.dot_dimension_numbers<[1], [0], [0], [1], [0, 0, 1, 1], [], []>} : vector<8x128xbf16>, vector<128x256xbf16>, vector<8x256xf32> -> vector<8x256xf32>
    %47 = arith.addf %8, %46 : vector<8x256xf32>
    %48 = vector.extract_strided_slice %47 {offsets = [0, 0], sizes = [8, 64], strides = [1, 1]} : vector<8x256xf32> to vector<8x64xf32>
    %49 = arith.negf %48 : vector<8x64xf32>
    %50 = math.exp %49 : vector<8x64xf32>
    %cst_19 = arith.constant 1.000000e+00 : f32
    %51 = vector.broadcast %cst_19 : f32 to vector<8x64xf32>
    %52 = arith.addf %51, %50 : vector<8x64xf32>
    %53 = arith.divf %51, %52 : vector<8x64xf32>
    %54 = vector.extract_strided_slice %47 {offsets = [0, 64], sizes = [8, 64], strides = [1, 1]} : vector<8x256xf32> to vector<8x64xf32>
    %55 = arith.negf %54 : vector<8x64xf32>
    %56 = math.exp %55 : vector<8x64xf32>
    %cst_20 = arith.constant 1.000000e+00 : f32
    %57 = vector.broadcast %cst_20 : f32 to vector<8x64xf32>
    %58 = arith.addf %57, %56 : vector<8x64xf32>
    %59 = arith.divf %57, %58 : vector<8x64xf32>
    %60 = vector.extract_strided_slice %47 {offsets = [0, 128], sizes = [8, 64], strides = [1, 1]} : vector<8x256xf32> to vector<8x64xf32>
    %61 = math.tanh %60 : vector<8x64xf32>
    %62 = vector.extract_strided_slice %47 {offsets = [0, 192], sizes = [8, 64], strides = [1, 1]} : vector<8x256xf32> to vector<8x64xf32>
    %63 = arith.negf %62 : vector<8x64xf32>
    %64 = math.exp %63 : vector<8x64xf32>
    %cst_21 = arith.constant 1.000000e+00 : f32
    %65 = vector.broadcast %cst_21 : f32 to vector<8x64xf32>
    %66 = arith.addf %65, %64 : vector<8x64xf32>
    %67 = arith.divf %65, %66 : vector<8x64xf32>
    %68 = arith.mulf %59, %12 : vector<8x64xf32>
    %69 = arith.mulf %53, %61 : vector<8x64xf32>
    %70 = arith.addf %68, %69 : vector<8x64xf32>
    %71 = math.tanh %70 : vector<8x64xf32>
    %72 = arith.mulf %67, %71 : vector<8x64xf32>
    %73 = vector.extract_strided_slice %5 {offsets = [8, 0], sizes = [8, 256], strides = [1, 1]} : vector<64x256xf32> to vector<8x256xf32>
    %74 = arith.truncf %42 : vector<8x64xf32> to vector<8x64xbf16>
    %c0_22 = arith.constant 0 : index
    %c0_23 = arith.constant 0 : index
    %75 = vector.load %arg3[%c0_22, %c0_23] : memref<64x256xbf16, #tpu.memory_space<vmem>>, vector<64x256xbf16>
    %cst_24 = arith.constant dense<0.000000e+00> : vector<8x256xf32>
    %76 = tpu.matmul %74, %75, %cst_24 {dimension_numbers = #tpu.dot_dimension_numbers<[1], [0], [0], [1], [0, 0, 1, 1], [], []>} : vector<8x64xbf16>, vector<64x256xbf16>, vector<8x256xf32> -> vector<8x256xf32>
    %77 = arith.addf %73, %76 : vector<8x256xf32>
    %78 = vector.extract_strided_slice %77 {offsets = [0, 0], sizes = [8, 64], strides = [1, 1]} : vector<8x256xf32> to vector<8x64xf32>
    %79 = arith.negf %78 : vector<8x64xf32>
    %80 = math.exp %79 : vector<8x64xf32>
    %cst_25 = arith.constant 1.000000e+00 : f32
    %81 = vector.broadcast %cst_25 : f32 to vector<8x64xf32>
    %82 = arith.addf %81, %80 : vector<8x64xf32>
    %83 = arith.divf %81, %82 : vector<8x64xf32>
    %84 = vector.extract_strided_slice %77 {offsets = [0, 64], sizes = [8, 64], strides = [1, 1]} : vector<8x256xf32> to vector<8x64xf32>
    %85 = arith.negf %84 : vector<8x64xf32>
    %86 = math.exp %85 : vector<8x64xf32>
    %cst_26 = arith.constant 1.000000e+00 : f32
    %87 = vector.broadcast %cst_26 : f32 to vector<8x64xf32>
    %88 = arith.addf %87, %86 : vector<8x64xf32>
    %89 = arith.divf %87, %88 : vector<8x64xf32>
    %90 = vector.extract_strided_slice %77 {offsets = [0, 128], sizes = [8, 64], strides = [1, 1]} : vector<8x256xf32> to vector<8x64xf32>
    %91 = math.tanh %90 : vector<8x64xf32>
    %92 = vector.extract_strided_slice %77 {offsets = [0, 192], sizes = [8, 64], strides = [1, 1]} : vector<8x256xf32> to vector<8x64xf32>
    %93 = arith.negf %92 : vector<8x64xf32>
    %94 = math.exp %93 : vector<8x64xf32>
    %cst_27 = arith.constant 1.000000e+00 : f32
    %95 = vector.broadcast %cst_27 : f32 to vector<8x64xf32>
    %96 = arith.addf %95, %94 : vector<8x64xf32>
    %97 = arith.divf %95, %96 : vector<8x64xf32>
    %98 = arith.mulf %89, %40 : vector<8x64xf32>
    %99 = arith.mulf %83, %91 : vector<8x64xf32>
    %100 = arith.addf %98, %99 : vector<8x64xf32>
    %101 = math.tanh %100 : vector<8x64xf32>
    %102 = arith.mulf %97, %101 : vector<8x64xf32>
    %103 = tpu.concatenate %102, %72 in 1 : vector<8x64xf32>, vector<8x64xf32> -> vector<8x128xf32>
    %104 = arith.truncf %103 : vector<8x128xf32> to vector<8x128xbf16>
    %c0_28 = arith.constant 0 : index
    %c0_29 = arith.constant 0 : index
    %105 = vector.load %arg4[%c0_28, %c0_29] : memref<128x256xbf16, #tpu.memory_space<vmem>>, vector<128x256xbf16>
    %cst_30 = arith.constant dense<0.000000e+00> : vector<8x256xf32>
    %106 = tpu.matmul %104, %105, %cst_30 {dimension_numbers = #tpu.dot_dimension_numbers<[1], [0], [0], [1], [0, 0, 1, 1], [], []>} : vector<8x128xbf16>, vector<128x256xbf16>, vector<8x256xf32> -> vector<8x256xf32>
    %107 = arith.addf %8, %106 : vector<8x256xf32>
    %108 = vector.extract_strided_slice %107 {offsets = [0, 0], sizes = [8, 64], strides = [1, 1]} : vector<8x256xf32> to vector<8x64xf32>
    %109 = arith.negf %108 : vector<8x64xf32>
    %110 = math.exp %109 : vector<8x64xf32>
    %cst_31 = arith.constant 1.000000e+00 : f32
    %111 = vector.broadcast %cst_31 : f32 to vector<8x64xf32>
    %112 = arith.addf %111, %110 : vector<8x64xf32>
    %113 = arith.divf %111, %112 : vector<8x64xf32>
    %114 = vector.extract_strided_slice %107 {offsets = [0, 64], sizes = [8, 64], strides = [1, 1]} : vector<8x256xf32> to vector<8x64xf32>
    %115 = arith.negf %114 : vector<8x64xf32>
    %116 = math.exp %115 : vector<8x64xf32>
    %cst_32 = arith.constant 1.000000e+00 : f32
    %117 = vector.broadcast %cst_32 : f32 to vector<8x64xf32>
    %118 = arith.addf %117, %116 : vector<8x64xf32>
    %119 = arith.divf %117, %118 : vector<8x64xf32>
    %120 = vector.extract_strided_slice %107 {offsets = [0, 128], sizes = [8, 64], strides = [1, 1]} : vector<8x256xf32> to vector<8x64xf32>
    %121 = math.tanh %120 : vector<8x64xf32>
    %122 = vector.extract_strided_slice %107 {offsets = [0, 192], sizes = [8, 64], strides = [1, 1]} : vector<8x256xf32> to vector<8x64xf32>
    %123 = arith.negf %122 : vector<8x64xf32>
    %124 = math.exp %123 : vector<8x64xf32>
    %cst_33 = arith.constant 1.000000e+00 : f32
    %125 = vector.broadcast %cst_33 : f32 to vector<8x64xf32>
    %126 = arith.addf %125, %124 : vector<8x64xf32>
    %127 = arith.divf %125, %126 : vector<8x64xf32>
    %128 = arith.mulf %119, %70 : vector<8x64xf32>
    %129 = arith.mulf %113, %121 : vector<8x64xf32>
    %130 = arith.addf %128, %129 : vector<8x64xf32>
    %131 = math.tanh %130 : vector<8x64xf32>
    %132 = arith.mulf %127, %131 : vector<8x64xf32>
    %133 = vector.extract_strided_slice %5 {offsets = [16, 0], sizes = [8, 256], strides = [1, 1]} : vector<64x256xf32> to vector<8x256xf32>
    %134 = arith.truncf %102 : vector<8x64xf32> to vector<8x64xbf16>
    %c0_34 = arith.constant 0 : index
    %c0_35 = arith.constant 0 : index
    %135 = vector.load %arg3[%c0_34, %c0_35] : memref<64x256xbf16, #tpu.memory_space<vmem>>, vector<64x256xbf16>
    %cst_36 = arith.constant dense<0.000000e+00> : vector<8x256xf32>
    %136 = tpu.matmul %134, %135, %cst_36 {dimension_numbers = #tpu.dot_dimension_numbers<[1], [0], [0], [1], [0, 0, 1, 1], [], []>} : vector<8x64xbf16>, vector<64x256xbf16>, vector<8x256xf32> -> vector<8x256xf32>
    %137 = arith.addf %133, %136 : vector<8x256xf32>
    %138 = vector.extract_strided_slice %137 {offsets = [0, 0], sizes = [8, 64], strides = [1, 1]} : vector<8x256xf32> to vector<8x64xf32>
    %139 = arith.negf %138 : vector<8x64xf32>
    %140 = math.exp %139 : vector<8x64xf32>
    %cst_37 = arith.constant 1.000000e+00 : f32
    %141 = vector.broadcast %cst_37 : f32 to vector<8x64xf32>
    %142 = arith.addf %141, %140 : vector<8x64xf32>
    %143 = arith.divf %141, %142 : vector<8x64xf32>
    %144 = vector.extract_strided_slice %137 {offsets = [0, 64], sizes = [8, 64], strides = [1, 1]} : vector<8x256xf32> to vector<8x64xf32>
    %145 = arith.negf %144 : vector<8x64xf32>
    %146 = math.exp %145 : vector<8x64xf32>
    %cst_38 = arith.constant 1.000000e+00 : f32
    %147 = vector.broadcast %cst_38 : f32 to vector<8x64xf32>
    %148 = arith.addf %147, %146 : vector<8x64xf32>
    %149 = arith.divf %147, %148 : vector<8x64xf32>
    %150 = vector.extract_strided_slice %137 {offsets = [0, 128], sizes = [8, 64], strides = [1, 1]} : vector<8x256xf32> to vector<8x64xf32>
    %151 = math.tanh %150 : vector<8x64xf32>
    %152 = vector.extract_strided_slice %137 {offsets = [0, 192], sizes = [8, 64], strides = [1, 1]} : vector<8x256xf32> to vector<8x64xf32>
    %153 = arith.negf %152 : vector<8x64xf32>
    %154 = math.exp %153 : vector<8x64xf32>
    %cst_39 = arith.constant 1.000000e+00 : f32
    %155 = vector.broadcast %cst_39 : f32 to vector<8x64xf32>
    %156 = arith.addf %155, %154 : vector<8x64xf32>
    %157 = arith.divf %155, %156 : vector<8x64xf32>
    %158 = arith.mulf %149, %100 : vector<8x64xf32>
    %159 = arith.mulf %143, %151 : vector<8x64xf32>
    %160 = arith.addf %158, %159 : vector<8x64xf32>
    %161 = math.tanh %160 : vector<8x64xf32>
    %162 = arith.mulf %157, %161 : vector<8x64xf32>
    %163 = tpu.concatenate %162, %132 in 1 : vector<8x64xf32>, vector<8x64xf32> -> vector<8x128xf32>
    %164 = arith.truncf %163 : vector<8x128xf32> to vector<8x128xbf16>
    %c0_40 = arith.constant 0 : index
    %c0_41 = arith.constant 0 : index
    %165 = vector.load %arg4[%c0_40, %c0_41] : memref<128x256xbf16, #tpu.memory_space<vmem>>, vector<128x256xbf16>
    %cst_42 = arith.constant dense<0.000000e+00> : vector<8x256xf32>
    %166 = tpu.matmul %164, %165, %cst_42 {dimension_numbers = #tpu.dot_dimension_numbers<[1], [0], [0], [1], [0, 0, 1, 1], [], []>} : vector<8x128xbf16>, vector<128x256xbf16>, vector<8x256xf32> -> vector<8x256xf32>
    %167 = arith.addf %8, %166 : vector<8x256xf32>
    %168 = vector.extract_strided_slice %167 {offsets = [0, 0], sizes = [8, 64], strides = [1, 1]} : vector<8x256xf32> to vector<8x64xf32>
    %169 = arith.negf %168 : vector<8x64xf32>
    %170 = math.exp %169 : vector<8x64xf32>
    %cst_43 = arith.constant 1.000000e+00 : f32
    %171 = vector.broadcast %cst_43 : f32 to vector<8x64xf32>
    %172 = arith.addf %171, %170 : vector<8x64xf32>
    %173 = arith.divf %171, %172 : vector<8x64xf32>
    %174 = vector.extract_strided_slice %167 {offsets = [0, 64], sizes = [8, 64], strides = [1, 1]} : vector<8x256xf32> to vector<8x64xf32>
    %175 = arith.negf %174 : vector<8x64xf32>
    %176 = math.exp %175 : vector<8x64xf32>
    %cst_44 = arith.constant 1.000000e+00 : f32
    %177 = vector.broadcast %cst_44 : f32 to vector<8x64xf32>
    %178 = arith.addf %177, %176 : vector<8x64xf32>
    %179 = arith.divf %177, %178 : vector<8x64xf32>
    %180 = vector.extract_strided_slice %167 {offsets = [0, 128], sizes = [8, 64], strides = [1, 1]} : vector<8x256xf32> to vector<8x64xf32>
    %181 = math.tanh %180 : vector<8x64xf32>
    %182 = vector.extract_strided_slice %167 {offsets = [0, 192], sizes = [8, 64], strides = [1, 1]} : vector<8x256xf32> to vector<8x64xf32>
    %183 = arith.negf %182 : vector<8x64xf32>
    %184 = math.exp %183 : vector<8x64xf32>
    %cst_45 = arith.constant 1.000000e+00 : f32
    %185 = vector.broadcast %cst_45 : f32 to vector<8x64xf32>
    %186 = arith.addf %185, %184 : vector<8x64xf32>
    %187 = arith.divf %185, %186 : vector<8x64xf32>
    %188 = arith.mulf %179, %130 : vector<8x64xf32>
    %189 = arith.mulf %173, %181 : vector<8x64xf32>
    %190 = arith.addf %188, %189 : vector<8x64xf32>
    %191 = math.tanh %190 : vector<8x64xf32>
    %192 = arith.mulf %187, %191 : vector<8x64xf32>
    %193 = vector.extract_strided_slice %5 {offsets = [24, 0], sizes = [8, 256], strides = [1, 1]} : vector<64x256xf32> to vector<8x256xf32>
    %194 = arith.truncf %162 : vector<8x64xf32> to vector<8x64xbf16>
    %c0_46 = arith.constant 0 : index
    %c0_47 = arith.constant 0 : index
    %195 = vector.load %arg3[%c0_46, %c0_47] : memref<64x256xbf16, #tpu.memory_space<vmem>>, vector<64x256xbf16>
    %cst_48 = arith.constant dense<0.000000e+00> : vector<8x256xf32>
    %196 = tpu.matmul %194, %195, %cst_48 {dimension_numbers = #tpu.dot_dimension_numbers<[1], [0], [0], [1], [0, 0, 1, 1], [], []>} : vector<8x64xbf16>, vector<64x256xbf16>, vector<8x256xf32> -> vector<8x256xf32>
    %197 = arith.addf %193, %196 : vector<8x256xf32>
    %198 = vector.extract_strided_slice %197 {offsets = [0, 0], sizes = [8, 64], strides = [1, 1]} : vector<8x256xf32> to vector<8x64xf32>
    %199 = arith.negf %198 : vector<8x64xf32>
    %200 = math.exp %199 : vector<8x64xf32>
    %cst_49 = arith.constant 1.000000e+00 : f32
    %201 = vector.broadcast %cst_49 : f32 to vector<8x64xf32>
    %202 = arith.addf %201, %200 : vector<8x64xf32>
    %203 = arith.divf %201, %202 : vector<8x64xf32>
    %204 = vector.extract_strided_slice %197 {offsets = [0, 64], sizes = [8, 64], strides = [1, 1]} : vector<8x256xf32> to vector<8x64xf32>
    %205 = arith.negf %204 : vector<8x64xf32>
    %206 = math.exp %205 : vector<8x64xf32>
    %cst_50 = arith.constant 1.000000e+00 : f32
    %207 = vector.broadcast %cst_50 : f32 to vector<8x64xf32>
    %208 = arith.addf %207, %206 : vector<8x64xf32>
    %209 = arith.divf %207, %208 : vector<8x64xf32>
    %210 = vector.extract_strided_slice %197 {offsets = [0, 128], sizes = [8, 64], strides = [1, 1]} : vector<8x256xf32> to vector<8x64xf32>
    %211 = math.tanh %210 : vector<8x64xf32>
    %212 = vector.extract_strided_slice %197 {offsets = [0, 192], sizes = [8, 64], strides = [1, 1]} : vector<8x256xf32> to vector<8x64xf32>
    %213 = arith.negf %212 : vector<8x64xf32>
    %214 = math.exp %213 : vector<8x64xf32>
    %cst_51 = arith.constant 1.000000e+00 : f32
    %215 = vector.broadcast %cst_51 : f32 to vector<8x64xf32>
    %216 = arith.addf %215, %214 : vector<8x64xf32>
    %217 = arith.divf %215, %216 : vector<8x64xf32>
    %218 = arith.mulf %209, %160 : vector<8x64xf32>
    %219 = arith.mulf %203, %211 : vector<8x64xf32>
    %220 = arith.addf %218, %219 : vector<8x64xf32>
    %221 = math.tanh %220 : vector<8x64xf32>
    %222 = arith.mulf %217, %221 : vector<8x64xf32>
    %223 = tpu.concatenate %222, %192 in 1 : vector<8x64xf32>, vector<8x64xf32> -> vector<8x128xf32>
    %224 = arith.truncf %223 : vector<8x128xf32> to vector<8x128xbf16>
    %c0_52 = arith.constant 0 : index
    %c0_53 = arith.constant 0 : index
    %225 = vector.load %arg4[%c0_52, %c0_53] : memref<128x256xbf16, #tpu.memory_space<vmem>>, vector<128x256xbf16>
    %cst_54 = arith.constant dense<0.000000e+00> : vector<8x256xf32>
    %226 = tpu.matmul %224, %225, %cst_54 {dimension_numbers = #tpu.dot_dimension_numbers<[1], [0], [0], [1], [0, 0, 1, 1], [], []>} : vector<8x128xbf16>, vector<128x256xbf16>, vector<8x256xf32> -> vector<8x256xf32>
    %227 = arith.addf %8, %226 : vector<8x256xf32>
    %228 = vector.extract_strided_slice %227 {offsets = [0, 0], sizes = [8, 64], strides = [1, 1]} : vector<8x256xf32> to vector<8x64xf32>
    %229 = arith.negf %228 : vector<8x64xf32>
    %230 = math.exp %229 : vector<8x64xf32>
    %cst_55 = arith.constant 1.000000e+00 : f32
    %231 = vector.broadcast %cst_55 : f32 to vector<8x64xf32>
    %232 = arith.addf %231, %230 : vector<8x64xf32>
    %233 = arith.divf %231, %232 : vector<8x64xf32>
    %234 = vector.extract_strided_slice %227 {offsets = [0, 64], sizes = [8, 64], strides = [1, 1]} : vector<8x256xf32> to vector<8x64xf32>
    %235 = arith.negf %234 : vector<8x64xf32>
    %236 = math.exp %235 : vector<8x64xf32>
    %cst_56 = arith.constant 1.000000e+00 : f32
    %237 = vector.broadcast %cst_56 : f32 to vector<8x64xf32>
    %238 = arith.addf %237, %236 : vector<8x64xf32>
    %239 = arith.divf %237, %238 : vector<8x64xf32>
    %240 = vector.extract_strided_slice %227 {offsets = [0, 128], sizes = [8, 64], strides = [1, 1]} : vector<8x256xf32> to vector<8x64xf32>
    %241 = math.tanh %240 : vector<8x64xf32>
    %242 = vector.extract_strided_slice %227 {offsets = [0, 192], sizes = [8, 64], strides = [1, 1]} : vector<8x256xf32> to vector<8x64xf32>
    %243 = arith.negf %242 : vector<8x64xf32>
    %244 = math.exp %243 : vector<8x64xf32>
    %cst_57 = arith.constant 1.000000e+00 : f32
    %245 = vector.broadcast %cst_57 : f32 to vector<8x64xf32>
    %246 = arith.addf %245, %244 : vector<8x64xf32>
    %247 = arith.divf %245, %246 : vector<8x64xf32>
    %248 = arith.mulf %239, %190 : vector<8x64xf32>
    %249 = arith.mulf %233, %241 : vector<8x64xf32>
    %250 = arith.addf %248, %249 : vector<8x64xf32>
    %251 = math.tanh %250 : vector<8x64xf32>
    %252 = arith.mulf %247, %251 : vector<8x64xf32>
    %253 = vector.extract_strided_slice %5 {offsets = [32, 0], sizes = [8, 256], strides = [1, 1]} : vector<64x256xf32> to vector<8x256xf32>
    %254 = arith.truncf %222 : vector<8x64xf32> to vector<8x64xbf16>
    %c0_58 = arith.constant 0 : index
    %c0_59 = arith.constant 0 : index
    %255 = vector.load %arg3[%c0_58, %c0_59] : memref<64x256xbf16, #tpu.memory_space<vmem>>, vector<64x256xbf16>
    %cst_60 = arith.constant dense<0.000000e+00> : vector<8x256xf32>
    %256 = tpu.matmul %254, %255, %cst_60 {dimension_numbers = #tpu.dot_dimension_numbers<[1], [0], [0], [1], [0, 0, 1, 1], [], []>} : vector<8x64xbf16>, vector<64x256xbf16>, vector<8x256xf32> -> vector<8x256xf32>
    %257 = arith.addf %253, %256 : vector<8x256xf32>
    %258 = vector.extract_strided_slice %257 {offsets = [0, 0], sizes = [8, 64], strides = [1, 1]} : vector<8x256xf32> to vector<8x64xf32>
    %259 = arith.negf %258 : vector<8x64xf32>
    %260 = math.exp %259 : vector<8x64xf32>
    %cst_61 = arith.constant 1.000000e+00 : f32
    %261 = vector.broadcast %cst_61 : f32 to vector<8x64xf32>
    %262 = arith.addf %261, %260 : vector<8x64xf32>
    %263 = arith.divf %261, %262 : vector<8x64xf32>
    %264 = vector.extract_strided_slice %257 {offsets = [0, 64], sizes = [8, 64], strides = [1, 1]} : vector<8x256xf32> to vector<8x64xf32>
    %265 = arith.negf %264 : vector<8x64xf32>
    %266 = math.exp %265 : vector<8x64xf32>
    %cst_62 = arith.constant 1.000000e+00 : f32
    %267 = vector.broadcast %cst_62 : f32 to vector<8x64xf32>
    %268 = arith.addf %267, %266 : vector<8x64xf32>
    %269 = arith.divf %267, %268 : vector<8x64xf32>
    %270 = vector.extract_strided_slice %257 {offsets = [0, 128], sizes = [8, 64], strides = [1, 1]} : vector<8x256xf32> to vector<8x64xf32>
    %271 = math.tanh %270 : vector<8x64xf32>
    %272 = vector.extract_strided_slice %257 {offsets = [0, 192], sizes = [8, 64], strides = [1, 1]} : vector<8x256xf32> to vector<8x64xf32>
    %273 = arith.negf %272 : vector<8x64xf32>
    %274 = math.exp %273 : vector<8x64xf32>
    %cst_63 = arith.constant 1.000000e+00 : f32
    %275 = vector.broadcast %cst_63 : f32 to vector<8x64xf32>
    %276 = arith.addf %275, %274 : vector<8x64xf32>
    %277 = arith.divf %275, %276 : vector<8x64xf32>
    %278 = arith.mulf %269, %220 : vector<8x64xf32>
    %279 = arith.mulf %263, %271 : vector<8x64xf32>
    %280 = arith.addf %278, %279 : vector<8x64xf32>
    %281 = math.tanh %280 : vector<8x64xf32>
    %282 = arith.mulf %277, %281 : vector<8x64xf32>
    %283 = tpu.concatenate %282, %252 in 1 : vector<8x64xf32>, vector<8x64xf32> -> vector<8x128xf32>
    %284 = arith.truncf %283 : vector<8x128xf32> to vector<8x128xbf16>
    %c0_64 = arith.constant 0 : index
    %c0_65 = arith.constant 0 : index
    %285 = vector.load %arg4[%c0_64, %c0_65] : memref<128x256xbf16, #tpu.memory_space<vmem>>, vector<128x256xbf16>
    %cst_66 = arith.constant dense<0.000000e+00> : vector<8x256xf32>
    %286 = tpu.matmul %284, %285, %cst_66 {dimension_numbers = #tpu.dot_dimension_numbers<[1], [0], [0], [1], [0, 0, 1, 1], [], []>} : vector<8x128xbf16>, vector<128x256xbf16>, vector<8x256xf32> -> vector<8x256xf32>
    %287 = arith.addf %8, %286 : vector<8x256xf32>
    %288 = vector.extract_strided_slice %287 {offsets = [0, 0], sizes = [8, 64], strides = [1, 1]} : vector<8x256xf32> to vector<8x64xf32>
    %289 = arith.negf %288 : vector<8x64xf32>
    %290 = math.exp %289 : vector<8x64xf32>
    %cst_67 = arith.constant 1.000000e+00 : f32
    %291 = vector.broadcast %cst_67 : f32 to vector<8x64xf32>
    %292 = arith.addf %291, %290 : vector<8x64xf32>
    %293 = arith.divf %291, %292 : vector<8x64xf32>
    %294 = vector.extract_strided_slice %287 {offsets = [0, 64], sizes = [8, 64], strides = [1, 1]} : vector<8x256xf32> to vector<8x64xf32>
    %295 = arith.negf %294 : vector<8x64xf32>
    %296 = math.exp %295 : vector<8x64xf32>
    %cst_68 = arith.constant 1.000000e+00 : f32
    %297 = vector.broadcast %cst_68 : f32 to vector<8x64xf32>
    %298 = arith.addf %297, %296 : vector<8x64xf32>
    %299 = arith.divf %297, %298 : vector<8x64xf32>
    %300 = vector.extract_strided_slice %287 {offsets = [0, 128], sizes = [8, 64], strides = [1, 1]} : vector<8x256xf32> to vector<8x64xf32>
    %301 = math.tanh %300 : vector<8x64xf32>
    %302 = vector.extract_strided_slice %287 {offsets = [0, 192], sizes = [8, 64], strides = [1, 1]} : vector<8x256xf32> to vector<8x64xf32>
    %303 = arith.negf %302 : vector<8x64xf32>
    %304 = math.exp %303 : vector<8x64xf32>
    %cst_69 = arith.constant 1.000000e+00 : f32
    %305 = vector.broadcast %cst_69 : f32 to vector<8x64xf32>
    %306 = arith.addf %305, %304 : vector<8x64xf32>
    %307 = arith.divf %305, %306 : vector<8x64xf32>
    %308 = arith.mulf %299, %250 : vector<8x64xf32>
    %309 = arith.mulf %293, %301 : vector<8x64xf32>
    %310 = arith.addf %308, %309 : vector<8x64xf32>
    %311 = math.tanh %310 : vector<8x64xf32>
    %312 = arith.mulf %307, %311 : vector<8x64xf32>
    %313 = vector.extract_strided_slice %5 {offsets = [40, 0], sizes = [8, 256], strides = [1, 1]} : vector<64x256xf32> to vector<8x256xf32>
    %314 = arith.truncf %282 : vector<8x64xf32> to vector<8x64xbf16>
    %c0_70 = arith.constant 0 : index
    %c0_71 = arith.constant 0 : index
    %315 = vector.load %arg3[%c0_70, %c0_71] : memref<64x256xbf16, #tpu.memory_space<vmem>>, vector<64x256xbf16>
    %cst_72 = arith.constant dense<0.000000e+00> : vector<8x256xf32>
    %316 = tpu.matmul %314, %315, %cst_72 {dimension_numbers = #tpu.dot_dimension_numbers<[1], [0], [0], [1], [0, 0, 1, 1], [], []>} : vector<8x64xbf16>, vector<64x256xbf16>, vector<8x256xf32> -> vector<8x256xf32>
    %317 = arith.addf %313, %316 : vector<8x256xf32>
    %318 = vector.extract_strided_slice %317 {offsets = [0, 0], sizes = [8, 64], strides = [1, 1]} : vector<8x256xf32> to vector<8x64xf32>
    %319 = arith.negf %318 : vector<8x64xf32>
    %320 = math.exp %319 : vector<8x64xf32>
    %cst_73 = arith.constant 1.000000e+00 : f32
    %321 = vector.broadcast %cst_73 : f32 to vector<8x64xf32>
    %322 = arith.addf %321, %320 : vector<8x64xf32>
    %323 = arith.divf %321, %322 : vector<8x64xf32>
    %324 = vector.extract_strided_slice %317 {offsets = [0, 64], sizes = [8, 64], strides = [1, 1]} : vector<8x256xf32> to vector<8x64xf32>
    %325 = arith.negf %324 : vector<8x64xf32>
    %326 = math.exp %325 : vector<8x64xf32>
    %cst_74 = arith.constant 1.000000e+00 : f32
    %327 = vector.broadcast %cst_74 : f32 to vector<8x64xf32>
    %328 = arith.addf %327, %326 : vector<8x64xf32>
    %329 = arith.divf %327, %328 : vector<8x64xf32>
    %330 = vector.extract_strided_slice %317 {offsets = [0, 128], sizes = [8, 64], strides = [1, 1]} : vector<8x256xf32> to vector<8x64xf32>
    %331 = math.tanh %330 : vector<8x64xf32>
    %332 = vector.extract_strided_slice %317 {offsets = [0, 192], sizes = [8, 64], strides = [1, 1]} : vector<8x256xf32> to vector<8x64xf32>
    %333 = arith.negf %332 : vector<8x64xf32>
    %334 = math.exp %333 : vector<8x64xf32>
    %cst_75 = arith.constant 1.000000e+00 : f32
    %335 = vector.broadcast %cst_75 : f32 to vector<8x64xf32>
    %336 = arith.addf %335, %334 : vector<8x64xf32>
    %337 = arith.divf %335, %336 : vector<8x64xf32>
    %338 = arith.mulf %329, %280 : vector<8x64xf32>
    %339 = arith.mulf %323, %331 : vector<8x64xf32>
    %340 = arith.addf %338, %339 : vector<8x64xf32>
    %341 = math.tanh %340 : vector<8x64xf32>
    %342 = arith.mulf %337, %341 : vector<8x64xf32>
    %343 = tpu.concatenate %342, %312 in 1 : vector<8x64xf32>, vector<8x64xf32> -> vector<8x128xf32>
    %344 = arith.truncf %343 : vector<8x128xf32> to vector<8x128xbf16>
    %c0_76 = arith.constant 0 : index
    %c0_77 = arith.constant 0 : index
    %345 = vector.load %arg4[%c0_76, %c0_77] : memref<128x256xbf16, #tpu.memory_space<vmem>>, vector<128x256xbf16>
    %cst_78 = arith.constant dense<0.000000e+00> : vector<8x256xf32>
    %346 = tpu.matmul %344, %345, %cst_78 {dimension_numbers = #tpu.dot_dimension_numbers<[1], [0], [0], [1], [0, 0, 1, 1], [], []>} : vector<8x128xbf16>, vector<128x256xbf16>, vector<8x256xf32> -> vector<8x256xf32>
    %347 = arith.addf %8, %346 : vector<8x256xf32>
    %348 = vector.extract_strided_slice %347 {offsets = [0, 0], sizes = [8, 64], strides = [1, 1]} : vector<8x256xf32> to vector<8x64xf32>
    %349 = arith.negf %348 : vector<8x64xf32>
    %350 = math.exp %349 : vector<8x64xf32>
    %cst_79 = arith.constant 1.000000e+00 : f32
    %351 = vector.broadcast %cst_79 : f32 to vector<8x64xf32>
    %352 = arith.addf %351, %350 : vector<8x64xf32>
    %353 = arith.divf %351, %352 : vector<8x64xf32>
    %354 = vector.extract_strided_slice %347 {offsets = [0, 64], sizes = [8, 64], strides = [1, 1]} : vector<8x256xf32> to vector<8x64xf32>
    %355 = arith.negf %354 : vector<8x64xf32>
    %356 = math.exp %355 : vector<8x64xf32>
    %cst_80 = arith.constant 1.000000e+00 : f32
    %357 = vector.broadcast %cst_80 : f32 to vector<8x64xf32>
    %358 = arith.addf %357, %356 : vector<8x64xf32>
    %359 = arith.divf %357, %358 : vector<8x64xf32>
    %360 = vector.extract_strided_slice %347 {offsets = [0, 128], sizes = [8, 64], strides = [1, 1]} : vector<8x256xf32> to vector<8x64xf32>
    %361 = math.tanh %360 : vector<8x64xf32>
    %362 = vector.extract_strided_slice %347 {offsets = [0, 192], sizes = [8, 64], strides = [1, 1]} : vector<8x256xf32> to vector<8x64xf32>
    %363 = arith.negf %362 : vector<8x64xf32>
    %364 = math.exp %363 : vector<8x64xf32>
    %cst_81 = arith.constant 1.000000e+00 : f32
    %365 = vector.broadcast %cst_81 : f32 to vector<8x64xf32>
    %366 = arith.addf %365, %364 : vector<8x64xf32>
    %367 = arith.divf %365, %366 : vector<8x64xf32>
    %368 = arith.mulf %359, %310 : vector<8x64xf32>
    %369 = arith.mulf %353, %361 : vector<8x64xf32>
    %370 = arith.addf %368, %369 : vector<8x64xf32>
    %371 = math.tanh %370 : vector<8x64xf32>
    %372 = arith.mulf %367, %371 : vector<8x64xf32>
    %373 = vector.extract_strided_slice %5 {offsets = [48, 0], sizes = [8, 256], strides = [1, 1]} : vector<64x256xf32> to vector<8x256xf32>
    %374 = arith.truncf %342 : vector<8x64xf32> to vector<8x64xbf16>
    %c0_82 = arith.constant 0 : index
    %c0_83 = arith.constant 0 : index
    %375 = vector.load %arg3[%c0_82, %c0_83] : memref<64x256xbf16, #tpu.memory_space<vmem>>, vector<64x256xbf16>
    %cst_84 = arith.constant dense<0.000000e+00> : vector<8x256xf32>
    %376 = tpu.matmul %374, %375, %cst_84 {dimension_numbers = #tpu.dot_dimension_numbers<[1], [0], [0], [1], [0, 0, 1, 1], [], []>} : vector<8x64xbf16>, vector<64x256xbf16>, vector<8x256xf32> -> vector<8x256xf32>
    %377 = arith.addf %373, %376 : vector<8x256xf32>
    %378 = vector.extract_strided_slice %377 {offsets = [0, 0], sizes = [8, 64], strides = [1, 1]} : vector<8x256xf32> to vector<8x64xf32>
    %379 = arith.negf %378 : vector<8x64xf32>
    %380 = math.exp %379 : vector<8x64xf32>
    %cst_85 = arith.constant 1.000000e+00 : f32
    %381 = vector.broadcast %cst_85 : f32 to vector<8x64xf32>
    %382 = arith.addf %381, %380 : vector<8x64xf32>
    %383 = arith.divf %381, %382 : vector<8x64xf32>
    %384 = vector.extract_strided_slice %377 {offsets = [0, 64], sizes = [8, 64], strides = [1, 1]} : vector<8x256xf32> to vector<8x64xf32>
    %385 = arith.negf %384 : vector<8x64xf32>
    %386 = math.exp %385 : vector<8x64xf32>
    %cst_86 = arith.constant 1.000000e+00 : f32
    %387 = vector.broadcast %cst_86 : f32 to vector<8x64xf32>
    %388 = arith.addf %387, %386 : vector<8x64xf32>
    %389 = arith.divf %387, %388 : vector<8x64xf32>
    %390 = vector.extract_strided_slice %377 {offsets = [0, 128], sizes = [8, 64], strides = [1, 1]} : vector<8x256xf32> to vector<8x64xf32>
    %391 = math.tanh %390 : vector<8x64xf32>
    %392 = vector.extract_strided_slice %377 {offsets = [0, 192], sizes = [8, 64], strides = [1, 1]} : vector<8x256xf32> to vector<8x64xf32>
    %393 = arith.negf %392 : vector<8x64xf32>
    %394 = math.exp %393 : vector<8x64xf32>
    %cst_87 = arith.constant 1.000000e+00 : f32
    %395 = vector.broadcast %cst_87 : f32 to vector<8x64xf32>
    %396 = arith.addf %395, %394 : vector<8x64xf32>
    %397 = arith.divf %395, %396 : vector<8x64xf32>
    %398 = arith.mulf %389, %340 : vector<8x64xf32>
    %399 = arith.mulf %383, %391 : vector<8x64xf32>
    %400 = arith.addf %398, %399 : vector<8x64xf32>
    %401 = math.tanh %400 : vector<8x64xf32>
    %402 = arith.mulf %397, %401 : vector<8x64xf32>
    %403 = tpu.concatenate %402, %372 in 1 : vector<8x64xf32>, vector<8x64xf32> -> vector<8x128xf32>
    %404 = arith.truncf %403 : vector<8x128xf32> to vector<8x128xbf16>
    %c0_88 = arith.constant 0 : index
    %c0_89 = arith.constant 0 : index
    %405 = vector.load %arg4[%c0_88, %c0_89] : memref<128x256xbf16, #tpu.memory_space<vmem>>, vector<128x256xbf16>
    %cst_90 = arith.constant dense<0.000000e+00> : vector<8x256xf32>
    %406 = tpu.matmul %404, %405, %cst_90 {dimension_numbers = #tpu.dot_dimension_numbers<[1], [0], [0], [1], [0, 0, 1, 1], [], []>} : vector<8x128xbf16>, vector<128x256xbf16>, vector<8x256xf32> -> vector<8x256xf32>
    %407 = arith.addf %8, %406 : vector<8x256xf32>
    %408 = vector.extract_strided_slice %407 {offsets = [0, 0], sizes = [8, 64], strides = [1, 1]} : vector<8x256xf32> to vector<8x64xf32>
    %409 = arith.negf %408 : vector<8x64xf32>
    %410 = math.exp %409 : vector<8x64xf32>
    %cst_91 = arith.constant 1.000000e+00 : f32
    %411 = vector.broadcast %cst_91 : f32 to vector<8x64xf32>
    %412 = arith.addf %411, %410 : vector<8x64xf32>
    %413 = arith.divf %411, %412 : vector<8x64xf32>
    %414 = vector.extract_strided_slice %407 {offsets = [0, 64], sizes = [8, 64], strides = [1, 1]} : vector<8x256xf32> to vector<8x64xf32>
    %415 = arith.negf %414 : vector<8x64xf32>
    %416 = math.exp %415 : vector<8x64xf32>
    %cst_92 = arith.constant 1.000000e+00 : f32
    %417 = vector.broadcast %cst_92 : f32 to vector<8x64xf32>
    %418 = arith.addf %417, %416 : vector<8x64xf32>
    %419 = arith.divf %417, %418 : vector<8x64xf32>
    %420 = vector.extract_strided_slice %407 {offsets = [0, 128], sizes = [8, 64], strides = [1, 1]} : vector<8x256xf32> to vector<8x64xf32>
    %421 = math.tanh %420 : vector<8x64xf32>
    %422 = vector.extract_strided_slice %407 {offsets = [0, 192], sizes = [8, 64], strides = [1, 1]} : vector<8x256xf32> to vector<8x64xf32>
    %423 = arith.negf %422 : vector<8x64xf32>
    %424 = math.exp %423 : vector<8x64xf32>
    %cst_93 = arith.constant 1.000000e+00 : f32
    %425 = vector.broadcast %cst_93 : f32 to vector<8x64xf32>
    %426 = arith.addf %425, %424 : vector<8x64xf32>
    %427 = arith.divf %425, %426 : vector<8x64xf32>
    %428 = arith.mulf %419, %370 : vector<8x64xf32>
    %429 = arith.mulf %413, %421 : vector<8x64xf32>
    %430 = arith.addf %428, %429 : vector<8x64xf32>
    %431 = math.tanh %430 : vector<8x64xf32>
    %432 = arith.mulf %427, %431 : vector<8x64xf32>
    %433 = vector.extract_strided_slice %5 {offsets = [56, 0], sizes = [8, 256], strides = [1, 1]} : vector<64x256xf32> to vector<8x256xf32>
    %434 = arith.truncf %402 : vector<8x64xf32> to vector<8x64xbf16>
    %c0_94 = arith.constant 0 : index
    %c0_95 = arith.constant 0 : index
    %435 = vector.load %arg3[%c0_94, %c0_95] : memref<64x256xbf16, #tpu.memory_space<vmem>>, vector<64x256xbf16>
    %cst_96 = arith.constant dense<0.000000e+00> : vector<8x256xf32>
    %436 = tpu.matmul %434, %435, %cst_96 {dimension_numbers = #tpu.dot_dimension_numbers<[1], [0], [0], [1], [0, 0, 1, 1], [], []>} : vector<8x64xbf16>, vector<64x256xbf16>, vector<8x256xf32> -> vector<8x256xf32>
    %437 = arith.addf %433, %436 : vector<8x256xf32>
    %438 = vector.extract_strided_slice %437 {offsets = [0, 0], sizes = [8, 64], strides = [1, 1]} : vector<8x256xf32> to vector<8x64xf32>
    %439 = arith.negf %438 : vector<8x64xf32>
    %440 = math.exp %439 : vector<8x64xf32>
    %cst_97 = arith.constant 1.000000e+00 : f32
    %441 = vector.broadcast %cst_97 : f32 to vector<8x64xf32>
    %442 = arith.addf %441, %440 : vector<8x64xf32>
    %443 = arith.divf %441, %442 : vector<8x64xf32>
    %444 = vector.extract_strided_slice %437 {offsets = [0, 64], sizes = [8, 64], strides = [1, 1]} : vector<8x256xf32> to vector<8x64xf32>
    %445 = arith.negf %444 : vector<8x64xf32>
    %446 = math.exp %445 : vector<8x64xf32>
    %cst_98 = arith.constant 1.000000e+00 : f32
    %447 = vector.broadcast %cst_98 : f32 to vector<8x64xf32>
    %448 = arith.addf %447, %446 : vector<8x64xf32>
    %449 = arith.divf %447, %448 : vector<8x64xf32>
    %450 = vector.extract_strided_slice %437 {offsets = [0, 128], sizes = [8, 64], strides = [1, 1]} : vector<8x256xf32> to vector<8x64xf32>
    %451 = math.tanh %450 : vector<8x64xf32>
    %452 = vector.extract_strided_slice %437 {offsets = [0, 192], sizes = [8, 64], strides = [1, 1]} : vector<8x256xf32> to vector<8x64xf32>
    %453 = arith.negf %452 : vector<8x64xf32>
    %454 = math.exp %453 : vector<8x64xf32>
    %cst_99 = arith.constant 1.000000e+00 : f32
    %455 = vector.broadcast %cst_99 : f32 to vector<8x64xf32>
    %456 = arith.addf %455, %454 : vector<8x64xf32>
    %457 = arith.divf %455, %456 : vector<8x64xf32>
    %458 = arith.mulf %449, %400 : vector<8x64xf32>
    %459 = arith.mulf %443, %451 : vector<8x64xf32>
    %460 = arith.addf %458, %459 : vector<8x64xf32>
    %461 = math.tanh %460 : vector<8x64xf32>
    %462 = arith.mulf %457, %461 : vector<8x64xf32>
    %463 = tpu.concatenate %462, %432 in 1 : vector<8x64xf32>, vector<8x64xf32> -> vector<8x128xf32>
    %464 = arith.truncf %463 : vector<8x128xf32> to vector<8x128xbf16>
    %c0_100 = arith.constant 0 : index
    %c0_101 = arith.constant 0 : index
    %465 = vector.load %arg4[%c0_100, %c0_101] : memref<128x256xbf16, #tpu.memory_space<vmem>>, vector<128x256xbf16>
    %cst_102 = arith.constant dense<0.000000e+00> : vector<8x256xf32>
    %466 = tpu.matmul %464, %465, %cst_102 {dimension_numbers = #tpu.dot_dimension_numbers<[1], [0], [0], [1], [0, 0, 1, 1], [], []>} : vector<8x128xbf16>, vector<128x256xbf16>, vector<8x256xf32> -> vector<8x256xf32>
    %467 = arith.addf %8, %466 : vector<8x256xf32>
    %468 = vector.extract_strided_slice %467 {offsets = [0, 0], sizes = [8, 64], strides = [1, 1]} : vector<8x256xf32> to vector<8x64xf32>
    %469 = arith.negf %468 : vector<8x64xf32>
    %470 = math.exp %469 : vector<8x64xf32>
    %cst_103 = arith.constant 1.000000e+00 : f32
    %471 = vector.broadcast %cst_103 : f32 to vector<8x64xf32>
    %472 = arith.addf %471, %470 : vector<8x64xf32>
    %473 = arith.divf %471, %472 : vector<8x64xf32>
    %474 = vector.extract_strided_slice %467 {offsets = [0, 64], sizes = [8, 64], strides = [1, 1]} : vector<8x256xf32> to vector<8x64xf32>
    %475 = arith.negf %474 : vector<8x64xf32>
    %476 = math.exp %475 : vector<8x64xf32>
    %cst_104 = arith.constant 1.000000e+00 : f32
    %477 = vector.broadcast %cst_104 : f32 to vector<8x64xf32>
    %478 = arith.addf %477, %476 : vector<8x64xf32>
    %479 = arith.divf %477, %478 : vector<8x64xf32>
    %480 = vector.extract_strided_slice %467 {offsets = [0, 128], sizes = [8, 64], strides = [1, 1]} : vector<8x256xf32> to vector<8x64xf32>
    %481 = math.tanh %480 : vector<8x64xf32>
    %482 = vector.extract_strided_slice %467 {offsets = [0, 192], sizes = [8, 64], strides = [1, 1]} : vector<8x256xf32> to vector<8x64xf32>
    %483 = arith.negf %482 : vector<8x64xf32>
    %484 = math.exp %483 : vector<8x64xf32>
    %cst_105 = arith.constant 1.000000e+00 : f32
    %485 = vector.broadcast %cst_105 : f32 to vector<8x64xf32>
    %486 = arith.addf %485, %484 : vector<8x64xf32>
    %487 = arith.divf %485, %486 : vector<8x64xf32>
    %488 = arith.mulf %479, %430 : vector<8x64xf32>
    %489 = arith.mulf %473, %481 : vector<8x64xf32>
    %490 = arith.addf %488, %489 : vector<8x64xf32>
    %491 = math.tanh %490 : vector<8x64xf32>
    %492 = arith.mulf %487, %491 : vector<8x64xf32>
    %c0_106 = arith.constant 0 : index
    %c0_107 = arith.constant 0 : index
    %493 = vector.load %arg6[%c0_106, %c0_107] : memref<1x64xf32, #tpu.memory_space<vmem>>, vector<1x64xf32>
    %494 = vector.broadcast %493 : vector<1x64xf32> to vector<8x64xf32>
    %495 = arith.mulf %492, %494 : vector<8x64xf32>
    %cst_108 = arith.constant dense<0.000000e+00> : vector<8xf32>
    %496 = vector.multi_reduction <add>, %495, %cst_108 [1] : vector<8x64xf32> to vector<8xf32>
    %497 = vector.shape_cast %496 : vector<8xf32> to vector<8x1xf32>
    %c0_109 = arith.constant 0 : index
    %c0_110 = arith.constant 0 : index
    %498 = vector.load %arg7[%c0_109, %c0_110] : memref<1x1xf32, #tpu.memory_space<vmem>>, vector<1x1xf32>
    %499 = vector.broadcast %498 : vector<1x1xf32> to vector<8x1xf32>
    %500 = arith.addf %497, %499 : vector<8x1xf32>
    %501 = vector.shape_cast %500 : vector<8x1xf32> to vector<8x1xf32>
    %502 = vector.broadcast %501 : vector<8x1xf32> to vector<8x128xf32>
    %c0_111 = arith.constant 0 : index
    %c0_112 = arith.constant 0 : index
    %503 = vector.load %arg8[%c0_111, %c0_112] : memref<8x128xf32, #tpu.memory_space<vmem>>, vector<8x128xf32>
    tpu.vector_store %arg8[%c0_111, %c0_112], %502 {strides = array<i32>} : memref<8x128xf32, #tpu.memory_space<vmem>>, vector<8x128xf32>,
    return
  }
  func.func @transform_0(%arg0: i32) -> (i32, i32) {
    %c0_i32 = arith.constant 0 : i32
    %c0_i32_0 = arith.constant 0 : i32
    %c0_i32_1 = arith.constant 0 : i32
    return %c0_i32, %c0_i32_0 : i32, i32
  }
  func.func @transform_1(%arg0: i32) -> (i32, i32) {
    %c0_i32 = arith.constant 0 : i32
    %c0_i32_0 = arith.constant 0 : i32
    %c0_i32_1 = arith.constant 0 : i32
    return %c0_i32, %c0_i32_0 : i32, i32
  }
  func.func @transform_2(%arg0: i32) -> (i32, i32) {
    %c0_i32 = arith.constant 0 : i32
    %c0_i32_0 = arith.constant 0 : i32
    %c0_i32_1 = arith.constant 0 : i32
    return %c0_i32, %c0_i32_0 : i32, i32
  }
  func.func @transform_3(%arg0: i32) -> (i32, i32) {
    %c0_i32 = arith.constant 0 : i32
    %c0_i32_0 = arith.constant 0 : i32
    %c0_i32_1 = arith.constant 0 : i32
    return %c0_i32, %c0_i32_0 : i32, i32
  }
  func.func @transform_4(%arg0: i32) -> (i32, i32) {
    %c0_i32 = arith.constant 0 : i32
    %c0_i32_0 = arith.constant 0 : i32
    %c0_i32_1 = arith.constant 0 : i32
    return %c0_i32, %c0_i32_0 : i32, i32
  }
  func.func @transform_5(%arg0: i32) -> (i32, i32) {
    %c0_i32 = arith.constant 0 : i32
    %c0_i32_0 = arith.constant 0 : i32
    %c0_i32_1 = arith.constant 0 : i32
    return %c0_i32, %c0_i32_0 : i32, i32
  }
  func.func @transform_6(%arg0: i32) -> (i32, i32) {
    %c0_i32 = arith.constant 0 : i32
    %c0_i32_0 = arith.constant 0 : i32
    %c0_i32_1 = arith.constant 0 : i32
    return %c0_i32, %c0_i32_0 : i32, i32
  }
  func.func @transform_7(%arg0: i32) -> (i32, i32) {
    %c0_i32 = arith.constant 0 : i32
    %c0_i32_0 = arith.constant 0 : i32
    %c0_i32_1 = arith.constant 0 : i32
    return %c0_i32, %c0_i32_0 : i32, i32
  }
}

</mosaic_0001>

<bundles_post_ra>
// kernel: stock_lstm_forward.1
= control target key start
LH: loop header
LB: loop body
LE: loop exit
PB: predicated region body
PF: predicated region fallthrough
CT: control target
= control target key end

     0   :  { %s2646_s0 = inlined_call_operand.vmem [shape: bf16[64,128], index: 0, kind: input, shape index: {}]   ;;  %s2647_s1 = inlined_call_operand.vmem [shape: bf16[128,256], index: 1, kind: input, shape index: {}]   ;;  %s2648_s2 = inlined_call_operand.hbm [shape: bf16[64,256], index: 2, kind: input, shape index: {}]   ;;  %s2649_s3 = inlined_call_operand.hbm [shape: bf16[128,256], index: 3, kind: input, shape index: {}]   ;;  %s2650_s4 = inlined_call_operand.vmem [shape: f32[2,256], index: 4, kind: input, shape index: {}]   ;;  %s2651_s5 = inlined_call_operand.vmem [shape: f32[1,64], index: 5, kind: input, shape index: {}]   ;;  %s2652_s6 = inlined_call_operand.<no memory space> [shape: f32[1,1], index: 6, kind: input, shape index: {}]   ;;  %s2653_s7 = inlined_call_operand.vmem [shape: f32[8,128], index: 7, kind: output, shape index: {}]  }
   0x1   :  { %v12_v0 = vstv %s2652_s6 }
   0x2   :  { %13 = vst [vmem:[#allocation2] sm:$0x1] %v12_v0 }
   0x3   :  { %14 = vsyncpa [#allocation4], 0 }
   0x4   :  { %15 = vsyncpa [#allocation6], 0  ;;  %s2025_s26 = smov [#allocation3]  }
   0x5   :  { %s25_s27 = sshll.u32 %s2025_s26, 4  ;;  %s26_s27 = int_to_ptr.vmem [resolvable:$true] %s25_s27 }
   0x6   :  { %s1989_s28 = scalar_lea.vmem %s26_s27, 1024  ;;  %p1994_p1 = scmp.lt.s32.totalorder %s26_s27, %s26_s27 }
   0x7   :  { %p1990_p0 = scmp.ne.s32.totalorder %s26_s27, %s1989_s28  ;;  %p1995_p2 = scmp.lt.s32.totalorder %s1989_s28, %s1989_s28 }
   0x9   :  { %p1996_p3 = por %p1995_p2, %p1994_p1 }
   0xb   :  { %p1997_p4 = pnand %p1996_p3, %p1990_p0 }
   0xd   :  { %2000 = shalt.err (!%p1997_p4)
}
   0xe   :  { %s2026_s29 = smov 128   ;;  %s2027_s30 = smov 8  }
   0xf   :  { %31 = dma.hbm_to_vmem [thread:$0]  %s2648_s2, 1024, %s26_s27, [#allocation4], %s2026_s29, %s2026_s29, %s2027_s30  }
  0x10   :  { %s2028_s6 = smov [#allocation5]  }
  0x11   :  { %s37_s10 = sshll.u32 %s2028_s6, 4  ;;  %s38_s10 = int_to_ptr.vmem [resolvable:$true] %s37_s10 }
  0x12   :  { %s2009_s11 = scalar_lea.vmem %s38_s10, 2048  ;;  %p2014_p6 = scmp.lt.s32.totalorder %s38_s10, %s38_s10 }
  0x13   :  { %p2010_p5 = scmp.ne.s32.totalorder %s38_s10, %s2009_s11  ;;  %p2015_p7 = scmp.lt.s32.totalorder %s2009_s11, %s2009_s11 }
  0x15   :  { %p2016_p8 = por %p2015_p7, %p2014_p6 }
  0x17   :  { %p2017_p9 = pnand %p2016_p8, %p2010_p5 }
  0x19   :  { %2020 = shalt.err (!%p2017_p9)
}
  0x1a   :  { %43 = dma.hbm_to_vmem [thread:$0]  %s2649_s3, 2048, %s38_s10, [#allocation6], %s2026_s29, %s2026_s29, %s2027_s30  }
  0x1b   :  { %2021 = dma.done.wait [#allocation4], 1024  }
  0x1c   :  { %2022 = vsyncadd [#allocation4], 4294966272 }
  0x1d   :  { %2023 = dma.done.wait [#allocation6], 2048  }
  0x1e   :  { %2024 = vsyncadd [#allocation6], 4294965248  ;;  %v2029_v1 = vmov 0   ;;  %v1701_v2 = vld [vmem:[%s2647_s1 + $0x74] ss:$8 sps:$4 sm:$0xff]   ;;  %v1737_v26 = vld [vmem:[%s2646_s0] sm:$0xff]   ;;  %v83_v27 = vlaneseq }
  0x1f   :  { %367 = vmatprep.mubr.bf16.mxu1 %v2029_v1  ;;  %229 = vmatprep.mubr.bf16.mxu0 %v2029_v1  ;;  %v1703_v3 = vld [vmem:[%s2647_s1 + $0x70] ss:$8 sps:$4 sm:$0xff]   ;;  %v1704_v4 = vld [vmem:[%s2647_s1 + $0x64] ss:$8 sps:$4 sm:$0xff]   ;;  %v1706_v5 = vld [vmem:[%s2647_s1 + $0x60] ss:$8 sps:$4 sm:$0xff]  }
  0x20   :  { %1700 = vset.pattern.permute.xlu0 %v2029_v1  ;;  %197 = vmatprep.subr.bf16.mxu0 %v1701_v2  ;;  %v1707_v6 = vld [vmem:[%s2647_s1 + $0x54] ss:$8 sps:$4 sm:$0xff]   ;;  %v1709_v9 = vld [vmem:[%s2647_s1 + $0x50] ss:$8 sps:$4 sm:$0xff]   ;;  %v1710_v10 = vld [vmem:[%s2647_s1 + $0x44] ss:$8 sps:$4 sm:$0xff]  }
  0x21   :  { %198 = vmatpush1.bf16.msra.mxu0 %v1703_v3  ;;  %v2098_v7 = vld [vmem:[#allocation3 + $0x34] ss:$8 sps:$4 sm:$0xff]   ;;  %v2100_v8 = vld [vmem:[#allocation3 + $0x30] ss:$8 sps:$4 sm:$0xff]   ;;  %v2110_v11 = vld [vmem:[#allocation3 + $0x24] ss:$8 sps:$4 sm:$0xff]  }
  0x22   :  { %199 = vmatprep.subr.bf16.mxu0 %v1704_v4  ;;  %343 = vmatprep.subr.bf16.mxu1 %v2098_v7  ;;  %v2112_v12 = vld [vmem:[#allocation3 + $0x20] ss:$8 sps:$4 sm:$0xff]   ;;  %v1716_v14 = vld [vmem:[%s2647_s1 + $0x34] ss:$8 sps:$4 sm:$0xff]   ;;  %v2127_v17 = vld [vmem:[#allocation3 + $0x4] ss:$8 sps:$4 sm:$0xff]  }
  0x23   :  { %344 = vmatpush1.bf16.msra.mxu1 %v2100_v8  ;;  %v1714_v13 = vld [vmem:[%s2647_s1 + $0x40] ss:$8 sps:$4 sm:$0xff]   ;;  %v2124_v16 = vld [vmem:[#allocation3 + $0x10] ss:$8 sps:$4 sm:$0xff]   ;;  %v1722_v19 = vld [vmem:[%s2647_s1 + $0x24] ss:$8 sps:$4 sm:$0xff]  }
  0x24   :  { %345 = vmatprep.subr.bf16.mxu1 %v2110_v11  ;;  %v2121_v15 = vld [vmem:[#allocation3 + $0x14] ss:$8 sps:$4 sm:$0xff]   ;;  %v2136_v20 = vld [vmem:[#allocation3] ss:$8 sps:$4 sm:$0xff]   ;;  %v2170_v29 = vshrl.u32 %v83_v27, 7  ;;  %s2030_s21 = smov 64  }
  0x25   :  { %200 = vmatpush1.bf16.msra.mxu0 %v1706_v5  ;;  %v1720_v18 = vld [vmem:[%s2647_s1 + $0x30] ss:$8 sps:$4 sm:$0xff]   ;;  %v1726_v21 = vld [vmem:[%s2647_s1 + $0x20] ss:$8 sps:$4 sm:$0xff]   ;;  %v1728_v22 = vld [vmem:[%s2647_s1 + $0x14] ss:$8 sps:$4 sm:$0xff]  }
  0x26   :  { %201 = vmatprep.subr.bf16.mxu0 %v1707_v6  ;;  %v1732_v23 = vld [vmem:[%s2647_s1 + $0x10] ss:$8 sps:$4 sm:$0xff]   ;;  %v1734_v24 = vld [vmem:[%s2647_s1 + $0x4] ss:$8 sps:$4 sm:$0xff]   ;;  %v1736_v25 = vld [vmem:[%s2647_s1] ss:$8 sps:$4 sm:$0xff]  }
  0x27   :  { %346 = vmatpush1.bf16.msra.mxu1 %v2112_v12  ;;  %v85_v31 = vsub.s32 0, %v2170_v29  ;;  %v81_v33 = vld [vmem:[%s2650_s4] ss:$2 sm:$0x3]  ;;  %v89_v40 = vsub.s32 1, %v2170_v29  ;;  %v1738_v50 = vld [vmem:[%s2646_s0 + $0x8] sm:$0xff]  }
  0x28   :  { %347 = vmatprep.subr.bf16.mxu1 %v2121_v15  ;;  %v2191_v51 = vld [vmem:[#allocation5 + $0x74] ss:$8 sps:$4 sm:$0xff]   ;;  %v2193_v52 = vld [vmem:[#allocation5 + $0x70] ss:$8 sps:$4 sm:$0xff]   ;;  %v2195_v53 = vld [vmem:[#allocation5 + $0x64] ss:$8 sps:$4 sm:$0xff]  }
  0x29   :  { %202 = vmatpush1.bf16.msra.mxu0 %v1709_v9  ;;  %v2178_v35 = vrot.slane %v81_v33, %v85_v31  ;;  %v2184_v41 = vrot.slane %v81_v33, %v89_v40  ;;  %v2200_v54 = vld [vmem:[#allocation5 + $0x60] ss:$8 sps:$4 sm:$0xff]   ;;  %v2203_v55 = vld [vmem:[#allocation5 + $0x54] ss:$8 sps:$4 sm:$0xff]   ;;  %v2209_v57 = vld [vmem:[#allocation5 + $0x50] ss:$8 sps:$4 sm:$0xff]  }
  0x2a   :  { %203 = vmatprep.subr.bf16.mxu0 %v1710_v10  ;;  %v1742_v56 = vld [vmem:[%s2646_s0 + $0x10] sm:$0xff]   ;;  %v2216_v59 = vld [vmem:[#allocation5 + $0x40] ss:$8 sps:$4 sm:$0xff]   ;;  %v1749_v61 = vld [vmem:[%s2646_s0 + $0x18] sm:$0xff]   ;;  %vm331_vm0 = vcmask 523264  }
  0x2b   :  { %348 = vmatpush1.bf16.msra.mxu1 %v2124_v16  ;;  %v2212_v58 = vld [vmem:[#allocation5 + $0x44] ss:$8 sps:$4 sm:$0xff]   ;;  %v2219_v60 = vld [vmem:[#allocation5 + $0x34] ss:$8 sps:$4 sm:$0xff]   ;;  %v2225_v62 = vld [vmem:[#allocation5 + $0x30] ss:$8 sps:$4 sm:$0xff]  }
  0x2c   :  { %349 = vmatprep.subr.bf16.mxu1 %v2127_v17  ;;  %v2228_v63 = vld [vmem:[#allocation5 + $0x24] ss:$8 sps:$4 sm:$0xff]   ;;  %v2231_v0 = vld [vmem:[#allocation5 + $0x20] ss:$8 sps:$4 sm:$0xff]   ;;  %v2235_v2 = vld [vmem:[#allocation5 + $0x14] ss:$8 sps:$4 sm:$0xff]  }
  0x2d   :  { %204 = vmatpush1.bf16.msra.mxu0 %v1714_v13  ;;  %v2238_v3 = vld [vmem:[#allocation5 + $0x10] ss:$8 sps:$4 sm:$0xff]   ;;  %vm1652_vm1 = vmpackc.low %vm331_vm0, %vm331_vm0 }
  0x2e   :  { %205 = vmatprep.subr.bf16.mxu0 %v1716_v14  ;;  %v2245_v14 = vld [vmem:[#allocation5 + $0x4] ss:$8 sps:$4 sm:$0xff]  }
  0x2f   :  { %350 = vmatpush1.bf16.msra.mxu1 %v2136_v20 }
  0x30   :  { %502 = vmatprep.subr.bf16.mxu1 %v2191_v51 }
  0x31   :  { %206 = vmatpush1.bf16.msra.mxu0 %v1720_v18  ;;  %v2247_v18 = vld [vmem:[#allocation5] ss:$8 sps:$4 sm:$0xff]  }
  0x32   :  { %207 = vmatprep.subr.bf16.mxu0 %v1722_v19  ;;  %368 = vmatmul.mubr.bf16.vlgmr.msra.gmra.mxu1 %v2029_v1 }
  0x33   :  { %534 = vmatprep.mubr.bf16.mxu1 %v2029_v1  ;;  %503 = vmatpush1.bf16.msra.mxu1 %v2193_v52 }
  0x34   :  { %504 = vmatprep.subr.bf16.mxu1 %v2195_v53 }
  0x35   :  { %208 = vmatpush1.bf16.msra.mxu0 %v1726_v21 }
  0x36   :  { %209 = vmatprep.subr.bf16.mxu0 %v1728_v22 }
  0x37   :  { %505 = vmatpush1.bf16.msra.mxu1 %v2200_v54 }
  0x38   :  { %506 = vmatprep.subr.bf16.mxu1 %v2203_v55 }
  0x39   :  { %210 = vmatpush1.bf16.msra.mxu0 %v1732_v23 }
  0x3a   :  { %211 = vmatprep.subr.bf16.mxu0 %v1734_v24 }
  0x3b   :  { %507 = vmatpush1.bf16.msra.mxu1 %v2209_v57 }
  0x3c   :  { %508 = vmatprep.subr.bf16.mxu1 %v2212_v58 }
  0x3d   :  { %212 = vmatpush1.bf16.msra.mxu0 %v1736_v25 }
  0x3e   :  { %582 = vmatprep.subr.bf16.mxu0 %v2098_v7 }
  0x3f   :  { %509 = vmatpush1.bf16.msra.mxu1 %v2216_v59 }
  0x40   :  { %230 = vmatmul.mubr.bf16.vlgmr.msra.gmra.mxu0 %v1737_v26  ;;  %510 = vmatprep.subr.bf16.mxu1 %v2219_v60 }
  0x41   :  { %583 = vmatpush1.bf16.msra.mxu0 %v2100_v8  ;;  %239 = vmatprep.mubr.bf16.mxu0 %v2029_v1 }
  0x42   :  { %584 = vmatprep.subr.bf16.mxu0 %v2110_v11 }
  0x43   :  { %511 = vmatpush1.bf16.msra.mxu1 %v2225_v62 }
  0x44   :  { %512 = vmatprep.subr.bf16.mxu1 %v2228_v63 }
  0x45   :  { %585 = vmatpush1.bf16.msra.mxu0 %v2112_v12 }
  0x46   :  { %586 = vmatprep.subr.bf16.mxu0 %v2121_v15 }
  0x47   :  { %513 = vmatpush1.bf16.msra.mxu1 %v2231_v0 }
  0x48   :  { %240 = vmatmul.mubr.bf16.gmra.mxu0 %v1738_v50  ;;  %514 = vmatprep.subr.bf16.mxu1 %v2235_v2 }
  0x49   :  { %587 = vmatpush1.bf16.msra.mxu0 %v2124_v16  ;;  %249 = vmatprep.mubr.bf16.mxu0 %v2029_v1 }
  0x4a   :  { %588 = vmatprep.subr.bf16.mxu0 %v2127_v17 }
  0x4b   :  { %515 = vmatpush1.bf16.msra.mxu1 %v2238_v3 }
  0x4c   :  { %516 = vmatprep.subr.bf16.mxu1 %v2245_v14 }
  0x4d   :  { %589 = vmatpush1.bf16.msra.mxu0 %v2136_v20 }
  0x4e   :  { %725 = vmatprep.subr.bf16.mxu0 %v2098_v7 }
  0x4f   :  { %517 = vmatpush1.bf16.msra.mxu1 %v2247_v18 }
  0x50   :  { %250 = vmatmul.mubr.bf16.gmra.mxu0 %v1742_v56  ;;  %645 = vmatprep.subr.bf16.mxu1 %v2191_v51 }
  0x51   :  { %259 = vmatprep.mubr.bf16.mxu0 %v2029_v1 }
  0x58   :  { %260 = vmatmul.mubr.bf16.gmra.mxu0 %v1749_v61 }
  0x59   :  { %606 = vmatprep.mubr.bf16.mxu0 %v2029_v1 }
  0xf2   :  { %v369_v28 = vpop.f32.mrf.mxu1 }
  0xf4   :  { %v371_v30 = vpop.f32.mrf.mxu1 }
  0xf6   :  { %v373_v32 = vpop.f32.mrf.mxu1 }
  0xf8   :  { %v374_v34 = vpop.f32.mrf.mxu1 }
 0x100   :  { %v231_v36 = vpop.f32.mrf.mxu0 }
 0x101   :  { %v232_v37 = vadd.f32 %v231_v36, %v2178_v35 }
 0x102   :  { %v233_v42 = vpop.f32.mrf.mxu0 }
 0x103   :  { %v376_v38 = vadd.f32 %v369_v28, %v232_v37  ;;  %v234_v43 = vadd.f32 %v233_v42, %v2184_v41 }
 0x104   :  { %v235_v27 = vpop.f32.mrf.mxu0 }
 0x105   :  { %v1634_v39 = vmul.f32 -1.442695, %v376_v38  ;;  %v377_v44 = vadd.f32 %v371_v30, %v234_v43 }
 0x106   :  { %v237_v28 = vpop.f32.mrf.mxu0 }
 0x107   :  { %1765 = vpow2.f32 %v1634_v39  ;;  %v1635_v4 = vmul.f32 -1.442695, %v377_v44 }
 0x108   :  { %1767 = vtanh.f32 %v377_v44  ;;  %v2283_v30 = vpop.f32.mrf.mxu0 }
 0x10a   :  { %v2285_v32 = vpop.f32.mrf.mxu0 }
 0x10c   :  { %v2287_v33 = vpop.f32.mrf.mxu0 }
 0x10e   :  { %v2289_v34 = vpop.f32.mrf.mxu0 }
 0x110   :  { %v2291_v36 = vpop.f32.mrf.mxu0 }
 0x112   :  { %v2293_v37 = vpop.f32.mrf.mxu0 }
 0x114   :  { %v1766_v45 = vpop.eup %1765  ;;  %v2295_v38 = vpop.f32.mrf.mxu0 }
 0x115   :  { %v381_v46 = vadd.f32 1.0, %v1766_v45  ;;  %v1768_v47 = vpop.eup %1767 }
 0x116   :  { %v2297_v39 = vpop.f32.mrf.mxu0 }
 0x117   :  { %1769 = vrcp.f32 %v381_v46  ;;  %v236_v46 = vadd.f32 %v235_v27, %v2178_v35 }
 0x118   :  { %1771 = vpow2.f32 %v1635_v4  ;;  %v2299_v42 = vpop.f32.mrf.mxu0 }
 0x11a   :  { %v2301_v43 = vpop.f32.mrf.mxu0 }
 0x11c   :  { %v2303_v44 = vpop.f32.mrf.mxu0 }
 0x11e   :  { %v2305_v45 = vpop.f32.mrf.mxu0 }
 0x124   :  { %v1770_v48 = vpop.eup %1769 }
 0x125   :  { %v392_v49 = vmul.f32 %v1770_v48, %v1768_v47  ;;  %v1772_v5 = vpop.eup %1771  ;;  %v391_v9 = vmul.f32 0.0, %v1770_v48  ;;  %v1625_v48 = vld [vmem:[%s2650_s4 + $0x1] ss:$2 sm:$0x3] }
 0x126   :  { %v388_v6 = vadd.f32 1.0, %v1772_v5  ;;  %v2313_v61 = vrot.slane %v1625_v48, %v85_v31 }
 0x127   :  { %394 = vrot.lane.b32.xlu0 %v392_v49, %s2030_s21 }
 0x128   :  { %1773 = vrcp.f32 %v388_v6 }
 0x135   :  { %v1774_v19 = vpop.eup %1773 }
 0x199   :  { %v395_v10 = vpop.permute.xlu0 %394 }
 0x19a   :  { %v2242_v13 = vadd.f32 %v395_v10, %v391_v9 }
 0x19c   :  { %1775 = vtanh.f32 %v2242_v13 }
 0x1a9   :  { %v1776_v21 = vpop.eup %1775 }
 0x1aa   :  { %v399_v22 = vmul.f32 %v1776_v21, %v1774_v19 }
 0x1ac   :  { %v567_v23 = vpack.c.bf16 %v399_v22, %v399_v22 }
 0x1ae   :  { %569 = vrot.lane.b32.xlu0 %v567_v23, %s2030_s21  ;;  %v238_v23 = vadd.f32 %v237_v28, %v2184_v41 }
 0x1b2   :  { %401 = vrot.lane.b32.xlu0 %v399_v22, %s2030_s21 }
 0x220   :  { %v570_v24 = vpop.permute.xlu0 %569 }
 0x221   :  { %1657 = vmatmul.mubr.msk.bf16.vlgmr.msra.gmra.mxu0 %vm331_vm0, %v570_v24 }
 0x222   :  { %726 = vmatpush1.bf16.msra.mxu0 %v2100_v8  ;;  %749 = vmatprep.mubr.bf16.mxu0 %v2029_v1 }
 0x223   :  { %727 = vmatprep.subr.bf16.mxu0 %v2110_v11 }
 0x224   :  { %v402_v25 = vpop.permute.xlu0 %401 }
 0x225   :  { %v1653_v26 = vpack.c.bf16 %v402_v25, %v402_v25 }
 0x226   :  { %728 = vmatpush1.bf16.msra.mxu0 %v2112_v12 }
 0x227   :  { %1654 = vmatmul.mubr.msk.bf16.vlgmr.msra.gmra.mxu1 %vm1652_vm1, %v1653_v26  ;;  %729 = vmatprep.subr.bf16.mxu0 %v2121_v15  ;;  %v2319_v26 = vrot.slane %v1625_v48, %v89_v40 }
 0x228   :  { %646 = vmatpush1.bf16.msra.mxu1 %v2193_v52  ;;  %677 = vmatprep.mubr.bf16.mxu1 %v2029_v1 }
 0x229   :  { %647 = vmatprep.subr.bf16.mxu1 %v2195_v53 }
 0x22a   :  { %730 = vmatpush1.bf16.msra.mxu0 %v2124_v16 }
 0x22b   :  { %731 = vmatprep.subr.bf16.mxu0 %v2127_v17 }
 0x22c   :  { %648 = vmatpush1.bf16.msra.mxu1 %v2200_v54 }
 0x22d   :  { %649 = vmatprep.subr.bf16.mxu1 %v2203_v55 }
 0x22e   :  { %732 = vmatpush1.bf16.msra.mxu0 %v2136_v20 }
 0x22f   :  { %788 = vmatprep.subr.bf16.mxu0 %v2191_v51 }
 0x230   :  { %650 = vmatpush1.bf16.msra.mxu1 %v2209_v57 }
 0x231   :  { %651 = vmatprep.subr.bf16.mxu1 %v2212_v58 }
 0x234   :  { %652 = vmatpush1.bf16.msra.mxu1 %v2216_v59 }
 0x235   :  { %653 = vmatprep.subr.bf16.mxu1 %v2219_v60 }
 0x238   :  { %654 = vmatpush1.bf16.msra.mxu1 %v2225_v62 }
 0x239   :  { %655 = vmatprep.subr.bf16.mxu1 %v2228_v63 }
 0x23c   :  { %656 = vmatpush1.bf16.msra.mxu1 %v2231_v0 }
 0x23d   :  { %657 = vmatprep.subr.bf16.mxu1 %v2235_v2 }
 0x240   :  { %658 = vmatpush1.bf16.msra.mxu1 %v2238_v3 }
 0x241   :  { %659 = vmatprep.subr.bf16.mxu1 %v2245_v14 }
 0x244   :  { %660 = vmatpush1.bf16.msra.mxu1 %v2247_v18 }
 0x245   :  { %868 = vmatprep.subr.bf16.mxu1 %v2098_v7 }
 0x2e1   :  { %v608_v47 = vpop.f32.mrf.mxu0 }
 0x2e2   :  { %v615_v49 = vadd.f32 %v608_v47, %v236_v46 }
 0x2e3   :  { %v610_v50 = vpop.f32.mrf.mxu0 }
 0x2e4   :  { %v1658_v56 = vmul.f32 -1.442695, %v615_v49  ;;  %v616_v24 = vadd.f32 %v610_v50, %v238_v23 }
 0x2e5   :  { %v612_v4 = vpop.f32.mrf.mxu0 }
 0x2e6   :  { %1777 = vpow2.f32 %v1658_v56  ;;  %v1659_v48 = vmul.f32 -1.442695, %v616_v24 }
 0x2e7   :  { %v536_v5 = vpop.f32.mrf.mxu1  ;;  %v613_v6 = vpop.f32.mrf.mxu0 }
 0x2e8   :  { %v543_v9 = vadd.f32 %v536_v5, %v2313_v61 }
 0x2e9   :  { %v538_v10 = vpop.f32.mrf.mxu1 }
 0x2ea   :  { %v1655_v19 = vmul.f32 -1.442695, %v543_v9  ;;  %v2322_v27 = vadd.f32 %v538_v10, %v2319_v26 }
 0x2eb   :  { %v540_v21 = vpop.f32.mrf.mxu1 }
 0x2ec   :  { %1779 = vpow2.f32 %v1655_v19 }
 0x2ed   :  { %v541_v22 = vpop.f32.mrf.mxu1  ;;  %1781 = vtanh.f32 %v616_v24 }
 0x2f3   :  { %v1778_v25 = vpop.eup %1777 }
 0x2f4   :  { %v620_v31 = vadd.f32 1.0, %v1778_v25 }
 0x2f6   :  { %1783 = vrcp.f32 %v620_v31 }
 0x2f7   :  { %1785 = vtanh.f32 %v2322_v27 }
 0x2f9   :  { %v1780_v46 = vpop.eup %1779 }
 0x2fa   :  { %v548_v47 = vadd.f32 1.0, %v1780_v46  ;;  %v1782_v49 = vpop.eup %1781 }
 0x2fc   :  { %1787 = vrcp.f32 %v548_v47 }
 0x2fd   :  { %1789 = vpow2.f32 %v1659_v48 }
 0x303   :  { %v1784_v56 = vpop.eup %1783 }
 0x304   :  { %v631_v28 = vmul.f32 %v1784_v56, %v1782_v49  ;;  %v1786_v50 = vpop.eup %1785  ;;  %v630_v6 = vmul.f32 %v1784_v56, %v2242_v13  ;;  %v242_v13 = vadd.f32 %v2283_v30, %v2178_v35  ;;  %v1656_v30 = vmul.f32 -1.442695, %v2322_v27 }
 0x306   :  { %633 = vrot.lane.b32.xlu1 %v631_v28, %s2030_s21  ;;  %v244_v28 = vadd.f32 %v2285_v32, %v2184_v41 }
 0x309   :  { %v1788_v29 = vpop.eup %1787 }
 0x30a   :  { %v559_v40 = vmul.f32 %v1788_v29, %v1786_v50  ;;  %v1790_v4 = vpop.eup %1789 }
 0x30b   :  { %v627_v5 = vadd.f32 1.0, %v1790_v4 }
 0x30c   :  { %561 = vrot.lane.b32.xlu0 %v559_v40, %s2030_s21 }
 0x30d   :  { %1791 = vrcp.f32 %v627_v5 }
 0x31a   :  { %v1792_v19 = vpop.eup %1791 }
 0x378   :  { %v634_v9 = vpop.permute.xlu1 %633 }
 0x379   :  { %v636_v10 = vadd.f32 %v634_v9, %v630_v6 }
 0x37b   :  { %1793 = vtanh.f32 %v636_v10 }
 0x388   :  { %v1794_v21 = vpop.eup %1793 }
 0x389   :  { %v638_v22 = vmul.f32 %v1794_v21, %v1792_v19  ;;  %v562_v19 = vpop.permute.xlu0 %561  ;;  %v558_v21 = vmul.f32 0.0, %v1788_v29 }
 0x38b   :  { %v710_v23 = vpack.c.bf16 %v638_v22, %v638_v22  ;;  %v2354_v32 = vadd.f32 %v562_v19, %v558_v21 }
 0x38d   :  { %712 = vrot.lane.b32.xlu1 %v710_v23, %s2030_s21 }
 0x3ff   :  { %v713_v25 = vpop.permute.xlu1 %712 }
 0x400   :  { %1662 = vmatmul.mubr.msk.bf16.vlgmr.msra.gmra.mxu0 %vm331_vm0, %v713_v25 }
 0x401   :  { %789 = vmatpush1.bf16.msra.mxu0 %v2193_v52  ;;  %820 = vmatprep.mubr.bf16.mxu0 %v2029_v1 }
 0x402   :  { %790 = vmatprep.subr.bf16.mxu0 %v2195_v53 }
 0x405   :  { %791 = vmatpush1.bf16.msra.mxu0 %v2200_v54 }
 0x406   :  { %792 = vmatprep.subr.bf16.mxu0 %v2203_v55 }
 0x409   :  { %793 = vmatpush1.bf16.msra.mxu0 %v2209_v57 }
 0x40a   :  { %794 = vmatprep.subr.bf16.mxu0 %v2212_v58 }
 0x40d   :  { %795 = vmatpush1.bf16.msra.mxu0 %v2216_v59 }
 0x40e   :  { %796 = vmatprep.subr.bf16.mxu0 %v2219_v60 }
 0x411   :  { %797 = vmatpush1.bf16.msra.mxu0 %v2225_v62 }
 0x412   :  { %798 = vmatprep.subr.bf16.mxu0 %v2228_v63 }
 0x415   :  { %799 = vmatpush1.bf16.msra.mxu0 %v2231_v0 }
 0x416   :  { %800 = vmatprep.subr.bf16.mxu0 %v2235_v2 }
 0x419   :  { %801 = vmatpush1.bf16.msra.mxu0 %v2238_v3 }
 0x41a   :  { %802 = vmatprep.subr.bf16.mxu0 %v2245_v14 }
 0x41d   :  { %803 = vmatpush1.bf16.msra.mxu0 %v2247_v18 }
 0x41e   :  { %1011 = vmatprep.subr.bf16.mxu0 %v2098_v7 }
 0x4c0   :  { %v751_v24 = vpop.f32.mrf.mxu0 }
 0x4c1   :  { %v758_v31 = vadd.f32 %v751_v24, %v242_v13 }
 0x4c2   :  { %v753_v46 = vpop.f32.mrf.mxu0 }
 0x4c3   :  { %v1663_v47 = vmul.f32 -1.442695, %v758_v31  ;;  %v759_v50 = vadd.f32 %v753_v46, %v244_v28 }
 0x4c4   :  { %v755_v49 = vpop.f32.mrf.mxu0 }
 0x4c5   :  { %1795 = vpow2.f32 %v1663_v47  ;;  %v1664_v9 = vmul.f32 -1.442695, %v759_v50 }
 0x4c6   :  { %v756_v56 = vpop.f32.mrf.mxu0  ;;  %1797 = vtanh.f32 %v759_v50 }
 0x4d2   :  { %v1796_v40 = vpop.eup %1795 }
 0x4d3   :  { %v763_v48 = vadd.f32 1.0, %v1796_v40  ;;  %v1798_v4 = vpop.eup %1797 }
 0x4d5   :  { %1799 = vrcp.f32 %v763_v48 }
 0x4d6   :  { %1801 = vpow2.f32 %v1656_v30 }
 0x4d7   :  { %1803 = vpow2.f32 %v1664_v9 }
 0x4d8   :  { %1805 = vtanh.f32 %v2354_v32 }
 0x4e2   :  { %v1800_v5 = vpop.eup %1799 }
 0x4e3   :  { %v774_v6 = vmul.f32 %v1800_v5, %v1798_v4  ;;  %v1802_v23 = vpop.eup %1801  ;;  %v773_v31 = vmul.f32 %v1800_v5, %v636_v10 }
 0x4e4   :  { %v555_v25 = vadd.f32 1.0, %v1802_v23  ;;  %v1804_v13 = vpop.eup %1803 }
 0x4e5   :  { %776 = vrot.lane.b32.xlu1 %v774_v6, %s2030_s21  ;;  %v770_v24 = vadd.f32 1.0, %v1804_v13  ;;  %v1806_v46 = vpop.eup %1805 }
 0x4e6   :  { %1807 = vrcp.f32 %v555_v25 }
 0x4e7   :  { %1809 = vrcp.f32 %v770_v24 }
 0x4e9   :  { %640 = vrot.lane.b32.xlu1 %v638_v22, %s2030_s21 }
 0x4f3   :  { %v1808_v27 = vpop.eup %1807 }
 0x4f4   :  { %v566_v29 = vmul.f32 %v1808_v27, %v1806_v46  ;;  %v1810_v10 = vpop.eup %1809 }
 0x557   :  { %v777_v47 = vpop.permute.xlu1 %776 }
 0x558   :  { %v2357_v22 = vadd.f32 %v777_v47, %v773_v31  ;;  %v246_v47 = vadd.f32 %v2287_v33, %v2178_v35 }
 0x55a   :  { %1811 = vtanh.f32 %v2357_v22 }
 0x55b   :  { %v641_v49 = vpop.permute.xlu1 %640 }
 0x55c   :  { %v643_v56 = vsel %vm331_vm0, %v641_v49, %v566_v29 }
 0x55d   :  { %v644_v28 = vpack.c.bf16 %v643_v56, %v643_v56 }
 0x55f   :  { %678 = vmatmul.mubr.bf16.vlgmr.msra.gmra.mxu1 %v644_v28 }
 0x560   :  { %869 = vmatpush1.bf16.msra.mxu1 %v2100_v8  ;;  %892 = vmatprep.mubr.bf16.mxu1 %v2029_v1 }
 0x561   :  { %870 = vmatprep.subr.bf16.mxu1 %v2110_v11 }
 0x564   :  { %871 = vmatpush1.bf16.msra.mxu1 %v2112_v12 }
 0x565   :  { %872 = vmatprep.subr.bf16.mxu1 %v2121_v15 }
 0x567   :  { %v1812_v50 = vpop.eup %1811 }
 0x568   :  { %v781_v40 = vmul.f32 %v1812_v50, %v1810_v10  ;;  %873 = vmatpush1.bf16.msra.mxu1 %v2124_v16 }
 0x569   :  { %874 = vmatprep.subr.bf16.mxu1 %v2127_v17 }
 0x56a   :  { %v853_v48 = vpack.c.bf16 %v781_v40, %v781_v40 }
 0x56c   :  { %855 = vrot.lane.b32.xlu0 %v853_v48, %s2030_s21  ;;  %875 = vmatpush1.bf16.msra.mxu1 %v2136_v20 }
 0x56d   :  { %931 = vmatprep.subr.bf16.mxu1 %v2191_v51 }
 0x570   :  { %783 = vrot.lane.b32.xlu0 %v781_v40, %s2030_s21  ;;  %v248_v40 = vadd.f32 %v2289_v34, %v2184_v41 }
 0x5de   :  { %v856_v4 = vpop.permute.xlu0 %855 }
 0x5df   :  { %1667 = vmatmul.mubr.msk.bf16.vlgmr.msra.gmra.mxu1 %vm331_vm0, %v856_v4 }
 0x5e0   :  { %932 = vmatpush1.bf16.msra.mxu1 %v2193_v52  ;;  %963 = vmatprep.mubr.bf16.mxu1 %v2029_v1 }
 0x5e1   :  { %933 = vmatprep.subr.bf16.mxu1 %v2195_v53 }
 0x5e4   :  { %934 = vmatpush1.bf16.msra.mxu1 %v2200_v54 }
 0x5e5   :  { %935 = vmatprep.subr.bf16.mxu1 %v2203_v55 }
 0x5e8   :  { %936 = vmatpush1.bf16.msra.mxu1 %v2209_v57 }
 0x5e9   :  { %937 = vmatprep.subr.bf16.mxu1 %v2212_v58 }
 0x5ec   :  { %938 = vmatpush1.bf16.msra.mxu1 %v2216_v59 }
 0x5ed   :  { %939 = vmatprep.subr.bf16.mxu1 %v2219_v60 }
 0x5f0   :  { %940 = vmatpush1.bf16.msra.mxu1 %v2225_v62 }
 0x5f1   :  { %941 = vmatprep.subr.bf16.mxu1 %v2228_v63 }
 0x5f4   :  { %942 = vmatpush1.bf16.msra.mxu1 %v2231_v0 }
 0x5f5   :  { %943 = vmatprep.subr.bf16.mxu1 %v2235_v2 }
 0x5f8   :  { %944 = vmatpush1.bf16.msra.mxu1 %v2238_v3 }
 0x5f9   :  { %945 = vmatprep.subr.bf16.mxu1 %v2245_v14 }
 0x5fc   :  { %946 = vmatpush1.bf16.msra.mxu1 %v2247_v18 }
 0x5fd   :  { %1154 = vmatprep.subr.bf16.mxu1 %v2098_v7 }
 0x61f   :  { %v679_v5 = vpop.f32.mrf.mxu1 }
 0x620   :  { %v686_v6 = vadd.f32 %v679_v5, %v2313_v61 }
 0x621   :  { %v681_v30 = vpop.f32.mrf.mxu1 }
 0x622   :  { %v1660_v9 = vmul.f32 -1.442695, %v686_v6  ;;  %v687_v23 = vadd.f32 %v681_v30, %v2319_v26 }
 0x623   :  { %v683_v19 = vpop.f32.mrf.mxu1 }
 0x624   :  { %1813 = vpow2.f32 %v1660_v9  ;;  %v1661_v27 = vmul.f32 -1.442695, %v687_v23 }
 0x625   :  { %v684_v21 = vpop.f32.mrf.mxu1  ;;  %1815 = vtanh.f32 %v687_v23 }
 0x631   :  { %v1814_v25 = vpop.eup %1813 }
 0x632   :  { %v691_v13 = vadd.f32 1.0, %v1814_v25  ;;  %v1816_v24 = vpop.eup %1815 }
 0x634   :  { %1817 = vrcp.f32 %v691_v13 }
 0x635   :  { %1819 = vpow2.f32 %v1661_v27 }
 0x641   :  { %v1818_v31 = vpop.eup %1817 }
 0x642   :  { %v702_v46 = vmul.f32 %v1818_v31, %v1816_v24  ;;  %v1820_v4 = vpop.eup %1819  ;;  %v701_v33 = vmul.f32 %v1818_v31, %v2354_v32 }
 0x643   :  { %v698_v30 = vadd.f32 1.0, %v1820_v4 }
 0x644   :  { %704 = vrot.lane.b32.xlu1 %v702_v46, %s2030_s21  ;;  %v784_v46 = vpop.permute.xlu0 %783 }
 0x69f   :  { %v894_v29 = vpop.f32.mrf.mxu1 }
 0x6a0   :  { %v901_v49 = vadd.f32 %v894_v29, %v246_v47 }
 0x6a1   :  { %v896_v56 = vpop.f32.mrf.mxu1 }
 0x6a2   :  { %v1668_v28 = vmul.f32 -1.442695, %v901_v49  ;;  %v902_v48 = vadd.f32 %v896_v56, %v248_v40 }
 0x6a3   :  { %v898_v10 = vpop.f32.mrf.mxu1 }
 0x6a4   :  { %1821 = vpow2.f32 %v1668_v28  ;;  %v1669_v32 = vmul.f32 -1.442695, %v902_v48 }
 0x6a5   :  { %v899_v50 = vpop.f32.mrf.mxu1  ;;  %1823 = vtanh.f32 %v902_v48 }
 0x6b1   :  { %v1822_v5 = vpop.eup %1821 }
 0x6b2   :  { %v906_v6 = vadd.f32 1.0, %v1822_v5  ;;  %v1824_v21 = vpop.eup %1823 }
 0x6b4   :  { %1825 = vrcp.f32 %v906_v6 }
 0x6b5   :  { %1827 = vrcp.f32 %v698_v30 }
 0x6b6   :  { %v705_v9 = vpop.permute.xlu1 %704 }
 0x6b7   :  { %v2398_v19 = vadd.f32 %v705_v9, %v701_v33 }
 0x6b9   :  { %1829 = vtanh.f32 %v2398_v19 }
 0x6ba   :  { %1831 = vpow2.f32 %v1669_v32 }
 0x6c1   :  { %v1826_v23 = vpop.eup %1825 }
 0x6c2   :  { %v917_v25 = vmul.f32 %v1826_v23, %v1824_v21  ;;  %v1828_v34 = vpop.eup %1827  ;;  %v916_v49 = vmul.f32 %v1826_v23, %v2357_v22 }
 0x6c4   :  { %919 = vrot.lane.b32.xlu1 %v917_v25, %s2030_s21 }
 0x6c6   :  { %v1830_v13 = vpop.eup %1829 }
 0x6c7   :  { %v709_v24 = vmul.f32 %v1830_v13, %v1828_v34  ;;  %v1832_v31 = vpop.eup %1831 }
 0x6c8   :  { %v913_v29 = vadd.f32 1.0, %v1832_v31 }
 0x6c9   :  { %v786_v47 = vsel %vm331_vm0, %v784_v46, %v709_v24 }
 0x6ca   :  { %v787_v27 = vpack.c.bf16 %v786_v47, %v786_v47  ;;  %1833 = vrcp.f32 %v913_v29 }
 0x6cc   :  { %821 = vmatmul.mubr.bf16.vlgmr.msra.gmra.mxu0 %v787_v27 }
 0x6cd   :  { %1012 = vmatpush1.bf16.msra.mxu0 %v2100_v8  ;;  %1035 = vmatprep.mubr.bf16.mxu0 %v2029_v1 }
 0x6ce   :  { %1013 = vmatprep.subr.bf16.mxu0 %v2110_v11 }
 0x6d1   :  { %1014 = vmatpush1.bf16.msra.mxu0 %v2112_v12 }
 0x6d2   :  { %1015 = vmatprep.subr.bf16.mxu0 %v2121_v15 }
 0x6d5   :  { %1016 = vmatpush1.bf16.msra.mxu0 %v2124_v16 }
 0x6d6   :  { %1017 = vmatprep.subr.bf16.mxu0 %v2127_v17 }
 0x6d7   :  { %v1834_v10 = vpop.eup %1833 }
 0x6d9   :  { %1018 = vmatpush1.bf16.msra.mxu0 %v2136_v20 }
 0x6da   :  { %1074 = vmatprep.subr.bf16.mxu0 %v2191_v51 }
 0x736   :  { %v920_v56 = vpop.permute.xlu1 %919 }
 0x737   :  { %v2413_v28 = vadd.f32 %v920_v56, %v916_v49 }
 0x739   :  { %1835 = vtanh.f32 %v2413_v28 }
 0x746   :  { %v1836_v50 = vpop.eup %1835 }
 0x747   :  { %v924_v40 = vmul.f32 %v1836_v50, %v1834_v10 }
 0x749   :  { %v996_v4 = vpack.c.bf16 %v924_v40, %v924_v40 }
 0x74b   :  { %998 = vrot.lane.b32.xlu0 %v996_v4, %s2030_s21 }
 0x74f   :  { %926 = vrot.lane.b32.xlu0 %v924_v40, %s2030_s21 }
 0x78c   :  { %v822_v48 = vpop.f32.mrf.mxu0 }
 0x78d   :  { %v829_v5 = vadd.f32 %v822_v48, %v2313_v61 }
 0x78e   :  { %v824_v6 = vpop.f32.mrf.mxu0 }
 0x78f   :  { %v1665_v30 = vmul.f32 -1.442695, %v829_v5  ;;  %v830_v9 = vadd.f32 %v824_v6, %v2319_v26 }
 0x790   :  { %v826_v22 = vpop.f32.mrf.mxu0 }
 0x791   :  { %1837 = vpow2.f32 %v1665_v30  ;;  %v1666_v46 = vmul.f32 -1.442695, %v830_v9 }
 0x792   :  { %v827_v33 = vpop.f32.mrf.mxu0  ;;  %1839 = vtanh.f32 %v830_v9 }
 0x79e   :  { %v1838_v21 = vpop.eup %1837 }
 0x79f   :  { %v834_v23 = vadd.f32 1.0, %v1838_v21  ;;  %v1840_v25 = vpop.eup %1839 }
 0x7a1   :  { %1841 = vrcp.f32 %v834_v23 }
 0x7a2   :  { %1843 = vpow2.f32 %v1666_v46 }
 0x7ae   :  { %v1842_v34 = vpop.eup %1841 }
 0x7af   :  { %v845_v13 = vmul.f32 %v1842_v34, %v1840_v25  ;;  %v1844_v47 = vpop.eup %1843  ;;  %v844_v32 = vmul.f32 %v1842_v34, %v2398_v19 }
 0x7b0   :  { %v841_v27 = vadd.f32 1.0, %v1844_v47 }
 0x7b1   :  { %847 = vrot.lane.b32.xlu1 %v845_v13, %s2030_s21 }
 0x7b2   :  { %1845 = vrcp.f32 %v841_v27 }
 0x7bd   :  { %v999_v24 = vpop.permute.xlu0 %998 }
 0x7be   :  { %1672 = vmatmul.mubr.msk.bf16.vlgmr.msra.gmra.mxu0 %vm331_vm0, %v999_v24 }
 0x7bf   :  { %1075 = vmatpush1.bf16.msra.mxu0 %v2193_v52  ;;  %1106 = vmatprep.mubr.bf16.mxu0 %v2029_v1  ;;  %v1846_v49 = vpop.eup %1845 }
 0x7c0   :  { %1076 = vmatprep.subr.bf16.mxu0 %v2195_v53 }
 0x7c1   :  { %v927_v50 = vpop.permute.xlu0 %926 }
 0x7c3   :  { %1077 = vmatpush1.bf16.msra.mxu0 %v2200_v54 }
 0x7c4   :  { %1078 = vmatprep.subr.bf16.mxu0 %v2203_v55 }
 0x7c7   :  { %1079 = vmatpush1.bf16.msra.mxu0 %v2209_v57 }
 0x7c8   :  { %1080 = vmatprep.subr.bf16.mxu0 %v2212_v58 }
 0x7cb   :  { %1081 = vmatpush1.bf16.msra.mxu0 %v2216_v59 }
 0x7cc   :  { %1082 = vmatprep.subr.bf16.mxu0 %v2219_v60 }
 0x7cf   :  { %1083 = vmatpush1.bf16.msra.mxu0 %v2225_v62 }
 0x7d0   :  { %1084 = vmatprep.subr.bf16.mxu0 %v2228_v63 }
 0x7d3   :  { %1085 = vmatpush1.bf16.msra.mxu0 %v2231_v0 }
 0x7d4   :  { %1086 = vmatprep.subr.bf16.mxu0 %v2235_v2 }
 0x7d7   :  { %1087 = vmatpush1.bf16.msra.mxu0 %v2238_v3 }
 0x7d8   :  { %1088 = vmatprep.subr.bf16.mxu0 %v2245_v14 }
 0x7db   :  { %1089 = vmatpush1.bf16.msra.mxu0 %v2247_v18 }
 0x7dc   :  { %1297 = vmatprep.subr.bf16.mxu0 %v2098_v7  ;;  %v252_v7 = vadd.f32 %v2291_v36, %v2178_v35 }
 0x823   :  { %v848_v31 = vpop.permute.xlu1 %847 }
 0x824   :  { %v2440_v29 = vadd.f32 %v848_v31, %v844_v32 }
 0x826   :  { %1847 = vtanh.f32 %v2440_v29 }
 0x833   :  { %v1848_v56 = vpop.eup %1847 }
 0x834   :  { %v852_v10 = vmul.f32 %v1848_v56, %v1846_v49 }
 0x836   :  { %v929_v40 = vsel %vm331_vm0, %v927_v50, %v852_v10 }
 0x837   :  { %v930_v4 = vpack.c.bf16 %v929_v40, %v929_v40 }
 0x839   :  { %964 = vmatmul.mubr.bf16.vlgmr.msra.gmra.mxu1 %v930_v4 }
 0x83a   :  { %1155 = vmatpush1.bf16.msra.mxu1 %v2100_v8  ;;  %1178 = vmatprep.mubr.bf16.mxu1 %v2029_v1 }
 0x83b   :  { %1156 = vmatprep.subr.bf16.mxu1 %v2110_v11 }
 0x83e   :  { %1157 = vmatpush1.bf16.msra.mxu1 %v2112_v12 }
 0x83f   :  { %1158 = vmatprep.subr.bf16.mxu1 %v2121_v15  ;;  %v254_v15 = vadd.f32 %v2293_v37, %v2184_v41 }
 0x842   :  { %1159 = vmatpush1.bf16.msra.mxu1 %v2124_v16 }
 0x843   :  { %1160 = vmatprep.subr.bf16.mxu1 %v2127_v17 }
 0x846   :  { %1161 = vmatpush1.bf16.msra.mxu1 %v2136_v20 }
 0x847   :  { %1217 = vmatprep.subr.bf16.mxu1 %v2191_v51 }
 0x87e   :  { %v1037_v8 = vpop.f32.mrf.mxu0 }
 0x87f   :  { %v1044_v19 = vadd.f32 %v1037_v8, %v252_v7 }
 0x880   :  { %v1039_v48 = vpop.f32.mrf.mxu0 }
 0x881   :  { %v1673_v5 = vmul.f32 -1.442695, %v1044_v19  ;;  %v1045_v16 = vadd.f32 %v1039_v48, %v254_v15 }
 0x882   :  { %v1041_v11 = vpop.f32.mrf.mxu0 }
 0x883   :  { %1849 = vpow2.f32 %v1673_v5  ;;  %v1674_v25 = vmul.f32 -1.442695, %v1045_v16 }
 0x884   :  { %v1042_v12 = vpop.f32.mrf.mxu0  ;;  %1851 = vtanh.f32 %v1045_v16 }
 0x890   :  { %v1850_v6 = vpop.eup %1849 }
 0x891   :  { %v1049_v17 = vadd.f32 1.0, %v1850_v6  ;;  %v1852_v20 = vpop.eup %1851 }
 0x893   :  { %1853 = vrcp.f32 %v1049_v17 }
 0x8a0   :  { %v1854_v30 = vpop.eup %1853 }
 0x8a1   :  { %v1060_v22 = vmul.f32 %v1854_v30, %v1852_v20  ;;  %v1059_v27 = vmul.f32 %v1854_v30, %v2413_v28  ;;  %v2479_v30 = vld [vmem:[#allocation3 + $0x30] ss:$8 sps:$4 sm:$0xff]  }
 0x8a3   :  { %1062 = vrot.lane.b32.xlu1 %v1060_v22, %s2030_s21 }
 0x8f9   :  { %v965_v36 = vpop.f32.mrf.mxu1 }
 0x8fa   :  { %v972_v33 = vadd.f32 %v965_v36, %v2313_v61 }
 0x8fb   :  { %v967_v9 = vpop.f32.mrf.mxu1 }
 0x8fc   :  { %v1670_v21 = vmul.f32 -1.442695, %v972_v33  ;;  %v973_v37 = vadd.f32 %v967_v9, %v2319_v26 }
 0x8fd   :  { %v969_v23 = vpop.f32.mrf.mxu1 }
 0x8fe   :  { %1855 = vpow2.f32 %v1670_v21  ;;  %v1671_v28 = vmul.f32 -1.442695, %v973_v37 }
 0x8ff   :  { %v970_v34 = vpop.f32.mrf.mxu1  ;;  %1857 = vpow2.f32 %v1674_v25 }
 0x900   :  { %1859 = vtanh.f32 %v973_v37 }
 0x90b   :  { %v1856_v13 = vpop.eup %1855 }
 0x90c   :  { %v977_v24 = vadd.f32 1.0, %v1856_v13  ;;  %v1858_v46 = vpop.eup %1857 }
 0x90d   :  { %v1056_v47 = vadd.f32 1.0, %v1858_v46  ;;  %v1860_v49 = vpop.eup %1859 }
 0x90e   :  { %1861 = vrcp.f32 %v977_v24 }
 0x90f   :  { %1863 = vrcp.f32 %v1056_v47 }
 0x915   :  { %v1063_v32 = vpop.permute.xlu1 %1062 }
 0x916   :  { %v2461_v31 = vadd.f32 %v1063_v32, %v1059_v27 }
 0x918   :  { %1865 = vtanh.f32 %v2461_v31 }
 0x919   :  { %1867 = vpow2.f32 %v1671_v28 }
 0x91b   :  { %v1862_v56 = vpop.eup %1861 }
 0x91c   :  { %v988_v10 = vmul.f32 %v1862_v56, %v1860_v49  ;;  %v1864_v50 = vpop.eup %1863  ;;  %v987_v48 = vmul.f32 %v1862_v56, %v2440_v29 }
 0x91e   :  { %990 = vrot.lane.b32.xlu1 %v988_v10, %s2030_s21 }
 0x925   :  { %v1866_v40 = vpop.eup %1865 }
 0x926   :  { %v1067_v4 = vmul.f32 %v1866_v40, %v1864_v50  ;;  %v1868_v8 = vpop.eup %1867 }
 0x927   :  { %v984_v19 = vadd.f32 1.0, %v1868_v8 }
 0x928   :  { %v1139_v7 = vpack.c.bf16 %v1067_v4, %v1067_v4 }
 0x929   :  { %1869 = vrcp.f32 %v984_v19 }
 0x92a   :  { %1141 = vrot.lane.b32.xlu0 %v1139_v7, %s2030_s21 }
 0x92e   :  { %1069 = vrot.lane.b32.xlu0 %v1067_v4, %s2030_s21 }
 0x936   :  { %v1870_v15 = vpop.eup %1869 }
 0x990   :  { %v991_v5 = vpop.permute.xlu1 %990 }
 0x991   :  { %v2468_v11 = vadd.f32 %v991_v5, %v987_v48 }
 0x993   :  { %1871 = vtanh.f32 %v2468_v11 }
 0x99c   :  { %v1142_v12 = vpop.permute.xlu0 %1141 }
 0x99d   :  { %1677 = vmatmul.mubr.msk.bf16.vlgmr.msra.gmra.mxu1 %vm331_vm0, %v1142_v12 }
 0x99e   :  { %1218 = vmatpush1.bf16.msra.mxu1 %v2193_v52  ;;  %1249 = vmatprep.mubr.bf16.mxu1 %v2029_v1  ;;  %v2483_v52 = vld [vmem:[#allocation3 + $0x24] ss:$8 sps:$4 sm:$0xff]  }
 0x99f   :  { %1219 = vmatprep.subr.bf16.mxu1 %v2195_v53  ;;  %v2488_v53 = vld [vmem:[#allocation3 + $0x20] ss:$8 sps:$4 sm:$0xff]  }
 0x9a0   :  { %v1872_v16 = vpop.eup %1871  ;;  %v1070_v17 = vpop.permute.xlu0 %1069 }
 0x9a1   :  { %v995_v6 = vmul.f32 %v1872_v16, %v1870_v15 }
 0x9a2   :  { %1220 = vmatpush1.bf16.msra.mxu1 %v2200_v54  ;;  %v2492_v54 = vld [vmem:[#allocation3 + $0x14] ss:$8 sps:$4 sm:$0xff]  }
 0x9a3   :  { %v1072_v29 = vsel %vm331_vm0, %v1070_v17, %v995_v6  ;;  %1221 = vmatprep.subr.bf16.mxu1 %v2203_v55  ;;  %v2496_v55 = vld [vmem:[#allocation3 + $0x10] ss:$8 sps:$4 sm:$0xff]  }
 0x9a4   :  { %v1073_v20 = vpack.c.bf16 %v1072_v29, %v1072_v29 }
 0x9a6   :  { %1107 = vmatmul.mubr.bf16.vlgmr.msra.gmra.mxu0 %v1073_v20  ;;  %1222 = vmatpush1.bf16.msra.mxu1 %v2209_v57  ;;  %v2500_v57 = vld [vmem:[#allocation3 + $0x4] ss:$8 sps:$4 sm:$0xff]   ;;  %v2531_v20 = vld [vmem:[#allocation5 + $0x70] ss:$8 sps:$4 sm:$0xff]  }
 0x9a7   :  { %1298 = vmatpush1.bf16.msra.mxu0 %v2479_v30  ;;  %1223 = vmatprep.subr.bf16.mxu1 %v2212_v58  ;;  %v2504_v58 = vld [vmem:[#allocation3] ss:$8 sps:$4 sm:$0xff]  }
 0x9a8   :  { %1299 = vmatprep.subr.bf16.mxu0 %v2483_v52  ;;  %1321 = vmatprep.mubr.bf16.mxu0 %v2029_v1 }
 0x9aa   :  { %1224 = vmatpush1.bf16.msra.mxu1 %v2216_v59  ;;  %v1964_v59 = vld [vmem:[#allocation3 + $0x34] ss:$8 sps:$4 sm:$0xff]  }
 0x9ab   :  { %1300 = vmatpush1.bf16.msra.mxu0 %v2488_v53  ;;  %1225 = vmatprep.subr.bf16.mxu1 %v2219_v60  ;;  %v256_v60 = vadd.f32 %v2295_v38, %v2178_v35 }
 0x9ac   :  { %1301 = vmatprep.subr.bf16.mxu0 %v2492_v54 }
 0x9ae   :  { %1226 = vmatpush1.bf16.msra.mxu1 %v2225_v62 }
 0x9af   :  { %1302 = vmatpush1.bf16.msra.mxu0 %v2496_v55  ;;  %1227 = vmatprep.subr.bf16.mxu1 %v2228_v63 }
 0x9b0   :  { %1303 = vmatprep.subr.bf16.mxu0 %v2500_v57 }
 0x9b2   :  { %1228 = vmatpush1.bf16.msra.mxu1 %v2231_v0 }
 0x9b3   :  { %1304 = vmatpush1.bf16.msra.mxu0 %v2504_v58  ;;  %1229 = vmatprep.subr.bf16.mxu1 %v2235_v2 }
 0x9b4   :  { %1360 = vmatprep.subr.bf16.mxu0 %v2191_v51 }
 0x9b6   :  { %1230 = vmatpush1.bf16.msra.mxu1 %v2238_v3 }
 0x9b7   :  { %1231 = vmatprep.subr.bf16.mxu1 %v2245_v14 }
 0x9ba   :  { %1232 = vmatpush1.bf16.msra.mxu1 %v2247_v18  ;;  %v258_v18 = vadd.f32 %v2297_v39, %v2184_v41 }
 0x9bb   :  { %1440 = vmatprep.subr.bf16.mxu1 %v1964_v59 }
 0xa5d   :  { %v1180_v62 = vpop.f32.mrf.mxu1 }
 0xa5e   :  { %v1187_v63 = vadd.f32 %v1180_v62, %v256_v60 }
 0xa5f   :  { %v1182_v0 = vpop.f32.mrf.mxu1 }
 0xa60   :  { %v1678_v22 = vmul.f32 -1.442695, %v1187_v63  ;;  %v1188_v23 = vadd.f32 %v1182_v0, %v258_v18  ;;  %v2539_v0 = vld [vmem:[#allocation5 + $0x60] ss:$8 sps:$4 sm:$0xff]  }
 0xa61   :  { %v1184_v36 = vpop.f32.mrf.mxu1 }
 0xa62   :  { %1873 = vpow2.f32 %v1678_v22  ;;  %v1679_v49 = vmul.f32 -1.442695, %v1188_v23  ;;  %v2542_v22 = vld [vmem:[#allocation5 + $0x54] ss:$8 sps:$4 sm:$0xff]   ;;  %v2547_v36 = vld [vmem:[#allocation5 + $0x50] ss:$8 sps:$4 sm:$0xff]  }
 0xa63   :  { %v1185_v2 = vpop.f32.mrf.mxu1 }
 0xa64   :  { %v2551_v2 = vld [vmem:[#allocation5 + $0x44] ss:$8 sps:$4 sm:$0xff]  }
 0xa66   :  { %v1108_v33 = vpop.f32.mrf.mxu0 }
 0xa67   :  { %v1115_v51 = vadd.f32 %v1108_v33, %v2313_v61  ;;  %v2555_v33 = vld [vmem:[#allocation5 + $0x40] ss:$8 sps:$4 sm:$0xff]  }
 0xa68   :  { %v1110_v3 = vpop.f32.mrf.mxu0 }
 0xa69   :  { %v1675_v9 = vmul.f32 -1.442695, %v1115_v51  ;;  %v1116_v34 = vadd.f32 %v1110_v3, %v2319_v26  ;;  %v2563_v51 = vld [vmem:[#allocation5 + $0x30] ss:$8 sps:$4 sm:$0xff]   ;;  %v2574_v3 = vld [vmem:[#allocation5 + $0x14] ss:$8 sps:$4 sm:$0xff]  }
 0xa6a   :  { %v1112_v14 = vpop.f32.mrf.mxu0 }
 0xa6b   :  { %1875 = vpow2.f32 %v1675_v9  ;;  %v1676_v48 = vmul.f32 -1.442695, %v1116_v34  ;;  %v2583_v9 = vld [vmem:[#allocation5] ss:$8 sps:$4 sm:$0xff]  }
 0xa6c   :  { %v1113_v21 = vpop.f32.mrf.mxu0  ;;  %1877 = vtanh.f32 %v1188_v23 }
 0xa6f   :  { %v1874_v38 = vpop.eup %1873 }
 0xa70   :  { %v1192_v25 = vadd.f32 1.0, %v1874_v38 }
 0xa72   :  { %1879 = vrcp.f32 %v1192_v25 }
 0xa73   :  { %1881 = vtanh.f32 %v1116_v34 }
 0xa78   :  { %v1876_v37 = vpop.eup %1875 }
 0xa79   :  { %v1120_v13 = vadd.f32 1.0, %v1876_v37  ;;  %v1878_v24 = vpop.eup %1877 }
 0xa7b   :  { %1883 = vrcp.f32 %v1120_v13 }
 0xa7c   :  { %1885 = vpow2.f32 %v1679_v49 }
 0xa7f   :  { %v1880_v46 = vpop.eup %1879 }
 0xa80   :  { %v1203_v47 = vmul.f32 %v1880_v46, %v1878_v24  ;;  %v1882_v27 = vpop.eup %1881  ;;  %v1202_v50 = vmul.f32 %v1880_v46, %v2461_v31 }
 0xa82   :  { %1205 = vrot.lane.b32.xlu1 %v1203_v47, %s2030_s21 }
 0xa88   :  { %v1884_v39 = vpop.eup %1883 }
 0xa89   :  { %v1131_v32 = vmul.f32 %v1884_v39, %v1882_v27  ;;  %v1886_v56 = vpop.eup %1885  ;;  %v1130_v12 = vmul.f32 %v1884_v39, %v2468_v11  ;;  %v2535_v11 = vld [vmem:[#allocation5 + $0x64] ss:$8 sps:$4 sm:$0xff]   ;;  %v264_v27 = vadd.f32 %v2301_v43, %v2184_v41 }
 0xa8a   :  { %v1199_v10 = vadd.f32 1.0, %v1886_v56 }
 0xa8b   :  { %1133 = vrot.lane.b32.xlu1 %v1131_v32, %s2030_s21 }
 0xa8c   :  { %1887 = vrcp.f32 %v1199_v10 }
 0xa99   :  { %v1888_v7 = vpop.eup %1887 }
 0xaf4   :  { %v1206_v40 = vpop.permute.xlu1 %1205 }
 0xaf5   :  { %v2521_v4 = vadd.f32 %v1206_v40, %v1202_v50 }
 0xaf7   :  { %1889 = vtanh.f32 %v2521_v4 }
 0xaf8   :  { %1891 = vpow2.f32 %v1676_v48 }
 0xafd   :  { %v1134_v5 = vpop.permute.xlu1 %1133 }
 0xafe   :  { %v2527_v15 = vadd.f32 %v1134_v5, %v1130_v12 }
 0xb00   :  { %1893 = vtanh.f32 %v2527_v15 }
 0xb04   :  { %v1890_v28 = vpop.eup %1889 }
 0xb05   :  { %v1210_v8 = vmul.f32 %v1890_v28, %v1888_v7  ;;  %v1892_v31 = vpop.eup %1891 }
 0xb06   :  { %v1127_v16 = vadd.f32 1.0, %v1892_v31 }
 0xb07   :  { %v1282_v19 = vpack.c.bf16 %v1210_v8, %v1210_v8 }
 0xb08   :  { %1895 = vrcp.f32 %v1127_v16 }
 0xb09   :  { %1284 = vrot.lane.b32.xlu0 %v1282_v19, %s2030_s21 }
 0xb0d   :  { %1212 = vrot.lane.b32.xlu0 %v1210_v8, %s2030_s21  ;;  %v1894_v6 = vpop.eup %1893 }
 0xb15   :  { %v1896_v29 = vpop.eup %1895 }
 0xb16   :  { %v1138_v59 = vmul.f32 %v1896_v29, %v1894_v6 }
 0xb7b   :  { %v1285_v17 = vpop.permute.xlu0 %1284 }
 0xb7c   :  { %1682 = vmatmul.mubr.msk.bf16.vlgmr.msra.gmra.mxu0 %vm331_vm0, %v1285_v17 }
 0xb7d   :  { %1361 = vmatpush1.bf16.msra.mxu0 %v2531_v20  ;;  %1392 = vmatprep.mubr.bf16.mxu0 %v2029_v1 }
 0xb7e   :  { %1362 = vmatprep.subr.bf16.mxu0 %v2535_v11 }
 0xb7f   :  { %v1213_v60 = vpop.permute.xlu0 %1212 }
 0xb80   :  { %v1215_v62 = vsel %vm331_vm0, %v1213_v60, %v1138_v59 }
 0xb81   :  { %v1216_v63 = vpack.c.bf16 %v1215_v62, %v1215_v62  ;;  %1363 = vmatpush1.bf16.msra.mxu0 %v2539_v0 }
 0xb82   :  { %1364 = vmatprep.subr.bf16.mxu0 %v2542_v22 }
 0xb83   :  { %1250 = vmatmul.mubr.bf16.vlgmr.msra.gmra.mxu1 %v1216_v63 }
 0xb84   :  { %1441 = vmatpush1.bf16.msra.mxu1 %v2479_v30  ;;  %1464 = vmatprep.mubr.bf16.mxu1 %v2029_v1  ;;  %v2559_v30 = vld [vmem:[#allocation5 + $0x34] ss:$8 sps:$4 sm:$0xff]  }
 0xb85   :  { %1365 = vmatpush1.bf16.msra.mxu0 %v2547_v36  ;;  %1442 = vmatprep.subr.bf16.mxu1 %v2483_v52  ;;  %v2567_v52 = vld [vmem:[#allocation5 + $0x24] ss:$8 sps:$4 sm:$0xff]  }
 0xb86   :  { %1366 = vmatprep.subr.bf16.mxu0 %v2551_v2 }
 0xb88   :  { %1443 = vmatpush1.bf16.msra.mxu1 %v2488_v53  ;;  %v2571_v53 = vld [vmem:[#allocation5 + $0x20] ss:$8 sps:$4 sm:$0xff]  }
 0xb89   :  { %1367 = vmatpush1.bf16.msra.mxu0 %v2555_v33  ;;  %1444 = vmatprep.subr.bf16.mxu1 %v2492_v54  ;;  %v1976_v54 = vld [vmem:[#allocation5 + $0x74] ss:$8 sps:$4 sm:$0xff]  }
 0xb8a   :  { %1368 = vmatprep.subr.bf16.mxu0 %v2559_v30 }
 0xb8c   :  { %1445 = vmatpush1.bf16.msra.mxu1 %v2496_v55  ;;  %v2577_v55 = vld [vmem:[#allocation5 + $0x10] ss:$8 sps:$4 sm:$0xff]  }
 0xb8d   :  { %1369 = vmatpush1.bf16.msra.mxu0 %v2563_v51  ;;  %1446 = vmatprep.subr.bf16.mxu1 %v2500_v57  ;;  %v2580_v57 = vld [vmem:[#allocation5 + $0x4] ss:$8 sps:$4 sm:$0xff]  }
 0xb8e   :  { %1370 = vmatprep.subr.bf16.mxu0 %v2567_v52 }
 0xb90   :  { %1447 = vmatpush1.bf16.msra.mxu1 %v2504_v58  ;;  %v262_v58 = vadd.f32 %v2299_v42, %v2178_v35 }
 0xb91   :  { %1371 = vmatpush1.bf16.msra.mxu0 %v2571_v53  ;;  %1503 = vmatprep.subr.bf16.mxu1 %v1976_v54 }
 0xb92   :  { %1372 = vmatprep.subr.bf16.mxu0 %v2574_v3 }
 0xb95   :  { %1373 = vmatpush1.bf16.msra.mxu0 %v2577_v55 }
 0xb96   :  { %1374 = vmatprep.subr.bf16.mxu0 %v2580_v57 }
 0xb99   :  { %1375 = vmatpush1.bf16.msra.mxu0 %v2583_v9 }
 0xc3c   :  { %v1323_v14 = vpop.f32.mrf.mxu0 }
 0xc3d   :  { %v1330_v18 = vadd.f32 %v1323_v14, %v262_v58 }
 0xc3e   :  { %v1325_v21 = vpop.f32.mrf.mxu0 }
 0xc3f   :  { %v1683_v23 = vmul.f32 -1.442695, %v1330_v18  ;;  %v1331_v39 = vadd.f32 %v1325_v21, %v264_v27 }
 0xc40   :  { %v1327_v38 = vpop.f32.mrf.mxu0 }
 0xc41   :  { %1897 = vpow2.f32 %v1683_v23  ;;  %v1684_v43 = vmul.f32 -1.442695, %v1331_v39 }
 0xc42   :  { %v1328_v25 = vpop.f32.mrf.mxu0 }
 0xc43   :  { %v1251_v34 = vpop.f32.mrf.mxu1 }
 0xc44   :  { %v1258_v37 = vadd.f32 %v1251_v34, %v2313_v61 }
 0xc45   :  { %v1253_v13 = vpop.f32.mrf.mxu1 }
 0xc46   :  { %v1680_v24 = vmul.f32 -1.442695, %v1258_v37  ;;  %v1259_v49 = vadd.f32 %v1253_v13, %v2319_v26 }
 0xc47   :  { %v1255_v46 = vpop.f32.mrf.mxu1 }
 0xc48   :  { %1899 = vpow2.f32 %v1680_v24  ;;  %v1681_v60 = vmul.f32 -1.442695, %v1259_v49 }
 0xc49   :  { %v1256_v47 = vpop.f32.mrf.mxu1  ;;  %1901 = vtanh.f32 %v1331_v39 }
 0xc4e   :  { %v1898_v42 = vpop.eup %1897 }
 0xc4f   :  { %v1335_v32 = vadd.f32 1.0, %v1898_v42 }
 0xc51   :  { %1903 = vrcp.f32 %v1335_v32 }
 0xc52   :  { %1905 = vtanh.f32 %v1259_v49 }
 0xc55   :  { %v1900_v56 = vpop.eup %1899 }
 0xc56   :  { %v1263_v10 = vadd.f32 1.0, %v1900_v56  ;;  %v1902_v50 = vpop.eup %1901 }
 0xc58   :  { %1907 = vrcp.f32 %v1263_v10 }
 0xc59   :  { %1909 = vpow2.f32 %v1684_v43 }
 0xc5e   :  { %v1904_v40 = vpop.eup %1903 }
 0xc5f   :  { %v1346_v7 = vmul.f32 %v1904_v40, %v1902_v50  ;;  %v1906_v28 = vpop.eup %1905  ;;  %v1345_v12 = vmul.f32 %v1904_v40, %v2521_v4 }
 0xc61   :  { %1348 = vrot.lane.b32.xlu1 %v1346_v7, %s2030_s21 }
 0xc65   :  { %v1908_v8 = vpop.eup %1907 }
 0xc66   :  { %v1274_v19 = vmul.f32 %v1908_v8, %v1906_v28  ;;  %v1910_v48 = vpop.eup %1909  ;;  %v1273_v63 = vmul.f32 %v1908_v8, %v2527_v15 }
 0xc67   :  { %v1342_v5 = vadd.f32 1.0, %v1910_v48 }
 0xc68   :  { %1276 = vrot.lane.b32.xlu1 %v1274_v19, %s2030_s21 }
 0xc69   :  { %1911 = vrcp.f32 %v1342_v5 }
 0xc76   :  { %v1912_v6 = vpop.eup %1911 }
 0xcd3   :  { %v1349_v31 = vpop.permute.xlu1 %1348 }
 0xcd4   :  { %v2595_v16 = vadd.f32 %v1349_v31, %v1345_v12 }
 0xcd6   :  { %1913 = vtanh.f32 %v2595_v16 }
 0xcd7   :  { %1915 = vpow2.f32 %v1681_v60 }
 0xcda   :  { %v1277_v62 = vpop.permute.xlu1 %1276 }
 0xcdb   :  { %v2601_v54 = vadd.f32 %v1277_v62, %v1273_v63 }
 0xcdd   :  { %1917 = vtanh.f32 %v2601_v54 }
 0xce3   :  { %v1914_v17 = vpop.eup %1913 }
 0xce4   :  { %v1353_v29 = vmul.f32 %v1914_v17, %v1912_v6  ;;  %v1916_v4 = vpop.eup %1915 }
 0xce5   :  { %v1270_v58 = vadd.f32 1.0, %v1916_v4 }
 0xce6   :  { %v1425_v59 = vpack.c.bf16 %v1353_v29, %v1353_v29 }
 0xce7   :  { %1919 = vrcp.f32 %v1270_v58 }
 0xce8   :  { %1427 = vrot.lane.b32.xlu0 %v1425_v59, %s2030_s21 }
 0xcea   :  { %v1918_v14 = vpop.eup %1917 }
 0xcec   :  { %1355 = vrot.lane.b32.xlu0 %v1353_v29, %s2030_s21  ;;  %v1692_v29 = vld [vmem:[%s2651_s5] ss:$0 sm:$0xff] }
 0xcf4   :  { %v1920_v21 = vpop.eup %1919 }
 0xcf5   :  { %v1281_v23 = vmul.f32 %v1920_v21, %v1918_v14 }
 0xd5a   :  { %v1428_v18 = vpop.permute.xlu0 %1427 }
 0xd5b   :  { %1687 = vmatmul.mubr.msk.bf16.vlgmr.msra.gmra.mxu1 %vm331_vm0, %v1428_v18 }
 0xd5c   :  { %1504 = vmatpush1.bf16.msra.mxu1 %v2531_v20  ;;  %1535 = vmatprep.mubr.bf16.mxu1 %v2029_v1  ;;  %v266_v1 = vadd.f32 %v2303_v44, %v2178_v35 }
 0xd5d   :  { %1505 = vmatprep.subr.bf16.mxu1 %v2535_v11 }
 0xd5e   :  { %v1356_v15 = vpop.permute.xlu0 %1355 }
 0xd5f   :  { %v1358_v38 = vsel %vm331_vm0, %v1356_v15, %v1281_v23 }
 0xd60   :  { %v1359_v25 = vpack.c.bf16 %v1358_v38, %v1358_v38  ;;  %1506 = vmatpush1.bf16.msra.mxu1 %v2539_v0 }
 0xd61   :  { %1507 = vmatprep.subr.bf16.mxu1 %v2542_v22 }
 0xd62   :  { %1393 = vmatmul.mubr.bf16.vlgmr.msra.gmra.mxu0 %v1359_v25 }
 0xd64   :  { %1508 = vmatpush1.bf16.msra.mxu1 %v2547_v36 }
 0xd65   :  { %1509 = vmatprep.subr.bf16.mxu1 %v2551_v2 }
 0xd68   :  { %1510 = vmatpush1.bf16.msra.mxu1 %v2555_v33 }
 0xd69   :  { %1511 = vmatprep.subr.bf16.mxu1 %v2559_v30 }
 0xd6c   :  { %1512 = vmatpush1.bf16.msra.mxu1 %v2563_v51 }
 0xd6d   :  { %1513 = vmatprep.subr.bf16.mxu1 %v2567_v52 }
 0xd70   :  { %1514 = vmatpush1.bf16.msra.mxu1 %v2571_v53 }
 0xd71   :  { %1515 = vmatprep.subr.bf16.mxu1 %v2574_v3 }
 0xd74   :  { %1516 = vmatpush1.bf16.msra.mxu1 %v2577_v55  ;;  %v268_v55 = vadd.f32 %v2305_v45, %v2184_v41 }
 0xd75   :  { %1517 = vmatprep.subr.bf16.mxu1 %v2580_v57 }
 0xd78   :  { %1518 = vmatpush1.bf16.msra.mxu1 %v2583_v9 }
 0xe1b   :  { %v1466_v20 = vpop.f32.mrf.mxu1 }
 0xe1c   :  { %v1473_v11 = vadd.f32 %v1466_v20, %v266_v1 }
 0xe1d   :  { %v1468_v0 = vpop.f32.mrf.mxu1 }
 0xe1e   :  { %v1688_v22 = vmul.f32 -1.442695, %v1473_v11  ;;  %v1474_v57 = vadd.f32 %v1468_v0, %v268_v55 }
 0xe1f   :  { %v1470_v36 = vpop.f32.mrf.mxu1 }
 0xe20   :  { %1921 = vpow2.f32 %v1688_v22  ;;  %v1689_v41 = vmul.f32 -1.442695, %v1474_v57 }
 0xe21   :  { %v1471_v2 = vpop.f32.mrf.mxu1 }
 0xe22   :  { %v1394_v33 = vpop.f32.mrf.mxu0 }
 0xe23   :  { %v1401_v30 = vadd.f32 %v1394_v33, %v2313_v61 }
 0xe24   :  { %v1396_v51 = vpop.f32.mrf.mxu0 }
 0xe25   :  { %v1685_v52 = vmul.f32 -1.442695, %v1401_v30  ;;  %v1402_v9 = vadd.f32 %v1396_v51, %v2319_v26  ;;  %v1693_v51 = vld [vmem:[#allocation2] ss:$0 sm:$0xff] }
 0xe26   :  { %v1398_v53 = vpop.f32.mrf.mxu0 }
 0xe27   :  { %1923 = vpow2.f32 %v1685_v52  ;;  %v1686_v7 = vmul.f32 -1.442695, %v1402_v9 }
 0xe28   :  { %v1399_v3 = vpop.f32.mrf.mxu0  ;;  %1925 = vtanh.f32 %v1474_v57 }
 0xe2d   :  { %v1922_v35 = vpop.eup %1921 }
 0xe2e   :  { %v1478_v44 = vadd.f32 1.0, %v1922_v35 }
 0xe30   :  { %1927 = vrcp.f32 %v1478_v44 }
 0xe31   :  { %1929 = vtanh.f32 %v1402_v9 }
 0xe34   :  { %v1924_v34 = vpop.eup %1923 }
 0xe35   :  { %v1406_v37 = vadd.f32 1.0, %v1924_v34  ;;  %v1926_v13 = vpop.eup %1925 }
 0xe37   :  { %1931 = vrcp.f32 %v1406_v37 }
 0xe38   :  { %1933 = vpow2.f32 %v1689_v41 }
 0xe3d   :  { %v1928_v24 = vpop.eup %1927 }
 0xe3e   :  { %v1489_v46 = vmul.f32 %v1928_v24, %v1926_v13  ;;  %v1930_v47 = vpop.eup %1929  ;;  %v1488_v32 = vmul.f32 %v1928_v24, %v2595_v16 }
 0xe40   :  { %1491 = vrot.lane.b32.xlu1 %v1489_v46, %s2030_s21 }
 0xe44   :  { %v1932_v27 = vpop.eup %1931 }
 0xe45   :  { %v1417_v39 = vmul.f32 %v1932_v27, %v1930_v47  ;;  %v1934_v45 = vpop.eup %1933  ;;  %v1416_v8 = vmul.f32 %v1932_v27, %v2601_v54 }
 0xe46   :  { %v1485_v42 = vadd.f32 1.0, %v1934_v45 }
 0xe47   :  { %1419 = vrot.lane.b32.xlu0 %v1417_v39, %s2030_s21 }
 0xe48   :  { %1935 = vrcp.f32 %v1485_v42 }
 0xe55   :  { %v1936_v10 = vpop.eup %1935 }
 0xeb2   :  { %v1492_v49 = vpop.permute.xlu1 %1491 }
 0xeb3   :  { %v1494_v56 = vadd.f32 %v1492_v49, %v1488_v32 }
 0xeb5   :  { %1937 = vtanh.f32 %v1494_v56 }
 0xeb6   :  { %1939 = vpow2.f32 %v1686_v7 }
 0xeb9   :  { %v1420_v28 = vpop.permute.xlu0 %1419 }
 0xeba   :  { %v1422_v43 = vadd.f32 %v1420_v28, %v1416_v8 }
 0xebc   :  { %1941 = vtanh.f32 %v1422_v43 }
 0xec2   :  { %v1938_v50 = vpop.eup %1937 }
 0xec3   :  { %v1496_v40 = vmul.f32 %v1938_v50, %v1936_v10  ;;  %v1940_v19 = vpop.eup %1939 }
 0xec4   :  { %v1413_v48 = vadd.f32 1.0, %v1940_v19 }
 0xec5   :  { %1498 = vrot.lane.b32.xlu1 %v1496_v40, %s2030_s21 }
 0xec6   :  { %1943 = vrcp.f32 %v1413_v48 }
 0xec9   :  { %v1942_v5 = vpop.eup %1941  ;;  %1574 = vrot.lane.b32.xlu1 %v1692_v29, %s2030_s21 }
 0xed3   :  { %v1944_v12 = vpop.eup %1943 }
 0xed4   :  { %v1424_v31 = vmul.f32 %v1944_v12, %v1942_v5 }
 0xf37   :  { %v1499_v16 = vpop.permute.xlu1 %1498 }
 0xf38   :  { %v1501_v6 = vsel %vm331_vm0, %v1499_v16, %v1424_v31 }
 0xf39   :  { %v1502_v17 = vpack.c.bf16 %v1501_v6, %v1501_v6 }
 0xf3b   :  { %1536 = vmatmul.mubr.bf16.vlgmr.msra.gmra.mxu1 %v1502_v17  ;;  %v1575_v22 = vpop.permute.xlu1 %1574 }
 0xffb   :  { %v1537_v59 = vpop.f32.mrf.mxu1 }
 0xffc   :  { %v1544_v60 = vadd.f32 %v1537_v59, %v2313_v61 }
 0xffd   :  { %v1539_v62 = vpop.f32.mrf.mxu1 }
 0xffe   :  { %v1690_v63 = vmul.f32 -1.442695, %v1544_v60  ;;  %v1545_v58 = vadd.f32 %v1539_v62, %v2319_v26 }
 0xfff   :  { %v1541_v4 = vpop.f32.mrf.mxu1 }
0x1000   :  { %1945 = vpow2.f32 %v1690_v63  ;;  %v1691_v38 = vmul.f32 -1.442695, %v1545_v58 }
0x1001   :  { %v1542_v54 = vpop.f32.mrf.mxu1  ;;  %1947 = vtanh.f32 %v1545_v58 }
0x100d   :  { %v1946_v14 = vpop.eup %1945 }
0x100e   :  { %v1549_v18 = vadd.f32 1.0, %v1946_v14  ;;  %v1948_v21 = vpop.eup %1947 }
0x1010   :  { %1949 = vrcp.f32 %v1549_v18 }
0x1011   :  { %1951 = vpow2.f32 %v1691_v38 }
0x101d   :  { %v1950_v23 = vpop.eup %1949 }
0x101e   :  { %v1560_v15 = vmul.f32 %v1950_v23, %v1948_v21  ;;  %v1952_v25 = vpop.eup %1951  ;;  %v1559_v1 = vmul.f32 %v1950_v23, %v1422_v43 }
0x101f   :  { %v1556_v61 = vadd.f32 1.0, %v1952_v25 }
0x1020   :  { %1562 = vrot.lane.b32.xlu0 %v1560_v15, %s2030_s21 }
0x1021   :  { %1953 = vrcp.f32 %v1556_v61 }
0x102e   :  { %v1954_v0 = vpop.eup %1953 }
0x1092   :  { %v1563_v20 = vpop.permute.xlu0 %1562 }
0x1093   :  { %v1565_v11 = vadd.f32 %v1563_v20, %v1559_v1 }
0x1095   :  { %1955 = vtanh.f32 %v1565_v11 }
0x10a2   :  { %v1956_v26 = vpop.eup %1955 }
0x10a3   :  { %v1567_v36 = vmul.f32 %v1956_v26, %v1954_v0 }
0x10a5   :  { %v1577_v2 = vmul.f32 %v1575_v22, %v1567_v36 }
0x10a7   :  { %1579 = vrot.lane.b32.xlu0 %v1577_v2, %s2030_s21 }
0x1119   :  { %v1580_v33 = vpop.permute.xlu0 %1579 }
0x111a   :  { %v1582_v30 = vsel %vm331_vm0, %v1580_v33, 0.0 }
0x111b   :  { %1583 = vadd.xlane.f32.xlu1 %v1582_v30 }
0x11a4   :  { %v1584_v52 = vpop.xlane.xlu1 %1583 }
0x11a5   :  { %v1592_v53 = vadd.f32 %v1693_v51, %v1584_v52 }
0x11a7   :  { %1595 = vperm.xlu0 %1700, %v1592_v53  }
0x1222   :  { %v1596_v3 = vpop.permute.xlu0 %1595 }
0x1223   :  { %1598 = vst [vmem:[%s2653_s7] sm:$0xff] %v1596_v3 }
0x1224   :  { %1603 = vsyncpa [#allocation4], 1 }
0x1225   :  { %1604 = vsyncpa [#allocation6], 1 }

</bundles_post_ra>
